<compile_context>
chip_gen: v7x
topology: tpu7x:2x2x1
jax: 0.10.0
libtpu: 0.0.40
codegen_flags: <defaults>
</compile_context>

<pallas_src>
import functools

import jax
import jax.numpy as jnp
from jax.experimental import pallas as pl
from jax.experimental.pallas import tpu as pltpu


# --------------------------------------------------------------------------
# Fused non-local block kernel (one grid step == one batch element).
#
#   x_ref      : (1, HW, C)  f32   activations, window-major pixel order
#   wt/wp/wg   : (C, IC)     bf16  theta / phi / g 1x1-conv weights
#   bt/bp/bg   : (1, IC)     f32   theta / phi / g biases
#   ww_ref     : (IC, C)     bf16  W 1x1-conv weight
#   scale_ref  : (1, C)      f32   folded BN scale  = gamma * rsqrt(var + eps)
#   shift_ref  : (1, C)      f32   folded BN shift  = (b_W - mean)*scale + beta
#   z_ref      : (1, HW, C)  f32   output (window-major pixel order)
# --------------------------------------------------------------------------
def _nonlocal_kernel(x_ref, wt_ref, wp_ref, wg_ref, bt_ref, bp_ref, bg_ref,
                     ww_ref, scale_ref, shift_ref, z_ref, *, n_pool, n_win):
    x = x_ref[0]                                   # (HW, C) f32
    xb = x.astype(jnp.bfloat16)

    # theta = 1x1 conv over all positions (bf16 MXU, f32 accumulation)
    theta = jnp.dot(xb, wt_ref[...],
                    preferred_element_type=jnp.float32) + bt_ref[...]   # (HW, IC)

    # phi / g = 1x1 conv followed by the 2x2 max-pool.  Rows are window-major:
    # sub-position k of every pooling window lives in rows [k*n_pool,(k+1)*n_pool),
    # so the pool is a max over the n_win per-block projections (bias is
    # per-channel, hence commutes with the max).
    def conv_pool(w_ref, b_ref):
        r = None
        for k in range(n_win):                     # static unroll (n_win == 4)
            xk = xb[k * n_pool:(k + 1) * n_pool, :]
            pk = jnp.dot(xk, w_ref[...], preferred_element_type=jnp.float32)
            r = pk if r is None else jnp.maximum(r, pk)
        return r + b_ref[...]                      # (Np, IC)

    phi = conv_pool(wp_ref, bp_ref)
    g = conv_pool(wg_ref, bg_ref)

    # f = theta @ phi^T ; softmax over keys ; y = softmax(f) @ g
    s = jax.lax.dot_general(theta.astype(jnp.bfloat16), phi.astype(jnp.bfloat16),
                            (((1,), (1,)), ((), ())),
                            preferred_element_type=jnp.float32)          # (HW, Np)
    m = jnp.max(s, axis=-1, keepdims=True)
    e = jnp.exp(s - m)
    p = e / jnp.sum(e, axis=-1, keepdims=True)

    y = jnp.dot(p.astype(jnp.bfloat16), g.astype(jnp.bfloat16),
                preferred_element_type=jnp.float32)                      # (HW, IC)

    # W 1x1-conv + folded eval-mode BatchNorm + residual, single HBM store.
    wy = jnp.dot(y.astype(jnp.bfloat16), ww_ref[...],
                 preferred_element_type=jnp.float32)                     # (HW, C)
    z_ref[0] = wy * scale_ref[...] + shift_ref[...] + x


def nonlocal_block_forward(x, params):
    """x: (B, C, H, W) f32 -> z: (B, C, H, W) f32 (PyTorch NCHW layout)."""
    B, C, H, W = x.shape
    ic = params["w_theta"].shape[1]
    assert H % 2 == 0 and W % 2 == 0
    Hh, Wh = H // 2, W // 2
    HW, Np, NWIN = H * W, Hh * Wh, 4

    # Window-major pixel permutation: row index = ((dy*2+dx)*Hh + i)*Wh + j.
    # This makes the 2x2 max-pool a max over contiguous row blocks in-kernel.
    xw = jnp.transpose(x, (0, 2, 3, 1))                  # NHWC
    xw = xw.reshape(B, Hh, 2, Wh, 2, C)
    xw = jnp.transpose(xw, (0, 2, 4, 1, 3, 5))           # (B, 2, 2, Hh, Wh, C)
    x3 = xw.reshape(B, HW, C)

    # Fold the W-conv bias and the eval-mode BatchNorm into one scale/shift.
    eps = 1e-5
    scale = params["bn_gamma"] * jax.lax.rsqrt(params["bn_var"] + eps)
    shift = (params["b_W"] - params["bn_mean"]) * scale + params["bn_beta"]

    bf = jnp.bfloat16
    vec = lambda v: v.reshape(1, -1).astype(jnp.float32)

    kernel = functools.partial(_nonlocal_kernel, n_pool=Np, n_win=NWIN)
    z3 = pl.pallas_call(
        kernel,
        out_shape=jax.ShapeDtypeStruct((B, HW, C), jnp.float32),
        grid_spec=pltpu.PrefetchScalarGridSpec(
            num_scalar_prefetch=0,
            grid=(B,),
            in_specs=[
                pl.BlockSpec((1, HW, C), lambda b: (b, 0, 0)),   # x (per batch)
                pl.BlockSpec((C, ic), lambda b: (0, 0)),         # w_theta
                pl.BlockSpec((C, ic), lambda b: (0, 0)),         # w_phi
                pl.BlockSpec((C, ic), lambda b: (0, 0)),         # w_g
                pl.BlockSpec((1, ic), lambda b: (0, 0)),         # b_theta
                pl.BlockSpec((1, ic), lambda b: (0, 0)),         # b_phi
                pl.BlockSpec((1, ic), lambda b: (0, 0)),         # b_g
                pl.BlockSpec((ic, C), lambda b: (0, 0)),         # w_W
                pl.BlockSpec((1, C), lambda b: (0, 0)),          # BN scale
                pl.BlockSpec((1, C), lambda b: (0, 0)),          # BN shift
            ],
            out_specs=pl.BlockSpec((1, HW, C), lambda b: (b, 0, 0)),
        ),
        compiler_params=pltpu.CompilerParams(
            dimension_semantics=("parallel",)),
    )(x3,
      params["w_theta"].astype(bf), params["w_phi"].astype(bf),
      params["w_g"].astype(bf),
      vec(params["b_theta"]), vec(params["b_phi"]), vec(params["b_g"]),
      params["w_W"].astype(bf), vec(scale), vec(shift))

    # Undo the window-major permutation and return NCHW.
    z = z3.reshape(B, 2, 2, Hh, Wh, C)
    z = jnp.transpose(z, (0, 3, 1, 4, 2, 5)).reshape(B, H, W, C)
    return jnp.transpose(z, (0, 3, 1, 2))


# --------------------------------------------------------------------------
# Pure-JAX reference (mirrors the PyTorch forward in the natural layout, with
# matmul operands cast to bf16 / f32 accumulation to match the kernel's MXU
# precision).  Used only for the self-check in __main__.
# --------------------------------------------------------------------------
def _conv1x1_ref(inp_nchw, w, b):
    B, Cin, H, W = inp_nchw.shape
    xf = jnp.transpose(inp_nchw, (0, 2, 3, 1)).reshape(B * H * W, Cin)
    o = jnp.dot(xf.astype(jnp.bfloat16), w.astype(jnp.bfloat16),
                preferred_element_type=jnp.float32) + b
    return jnp.transpose(o.reshape(B, H, W, -1), (0, 3, 1, 2))


def nonlocal_ref(x, params):
    B, C, H, W = x.shape
    ic = params["w_theta"].shape[1]
    bf = jnp.bfloat16

    def pool(m):
        Bq, oc, Hq, Wq = m.shape
        return m.reshape(Bq, oc, Hq // 2, 2, Wq // 2, 2).max(axis=(3, 5))

    g_x = pool(_conv1x1_ref(x, params["w_g"], params["b_g"])).reshape(B, ic, -1)
    g_x = jnp.transpose(g_x, (0, 2, 1))                                    # (B, Np, IC)
    theta_x = _conv1x1_ref(x, params["w_theta"], params["b_theta"]).reshape(B, ic, -1)
    theta_x = jnp.transpose(theta_x, (0, 2, 1))                            # (B, HW, IC)
    phi_x = pool(_conv1x1_ref(x, params["w_phi"], params["b_phi"])).reshape(B, ic, -1)

    f = jnp.einsum("bnd,bdm->bnm", theta_x.astype(bf), phi_x.astype(bf),
                   preferred_element_type=jnp.float32)
    f_div_C = jax.nn.softmax(f, axis=-1)
    y = jnp.einsum("bnm,bmd->bnd", f_div_C.astype(bf), g_x.astype(bf),
                   preferred_element_type=jnp.float32)
    y = jnp.transpose(y, (0, 2, 1)).reshape(B, ic, H, W)

    w_y = _conv1x1_ref(y, params["w_W"], params["b_W"])
    scale = params["bn_gamma"] * jax.lax.rsqrt(params["bn_var"] + 1e-5)
    shift = params["bn_beta"] - params["bn_mean"] * scale
    w_y = w_y * scale[None, :, None, None] + shift[None, :, None, None]
    return w_y + x


# --------------------------------------------------------------------------
# Deterministic synthetic parameters.
# NOTE: the PyTorch module zero-inits the BN affine (which makes z == x at
# init); random values are used here so the full numeric path is exercised.
# --------------------------------------------------------------------------
def init_params(key, C, ic):
    ks = jax.random.split(key, 12)
    w = lambda k, fan_in, shape: (jax.random.normal(k, shape, jnp.float32)
                                  / jnp.sqrt(float(fan_in)))
    return dict(
        w_theta=w(ks[0], C, (C, ic)), b_theta=0.1 * w(ks[1], C, (ic,)),
        w_phi=w(ks[2], C, (C, ic)), b_phi=0.1 * w(ks[3], C, (ic,)),
        w_g=w(ks[4], C, (C, ic)), b_g=0.1 * w(ks[5], C, (ic,)),
        w_W=w(ks[6], ic, (ic, C)), b_W=0.1 * w(ks[7], ic, (C,)),
        bn_gamma=1.0 + 0.5 * jax.random.normal(ks[8], (C,), jnp.float32),
        bn_beta=0.1 * jax.random.normal(ks[9], (C,), jnp.float32),
        bn_mean=0.1 * jax.random.normal(ks[10], (C,), jnp.float32),
        bn_var=jax.random.uniform(ks[11], (C,), jnp.float32, 0.5, 1.5),
    )


if __name__ == "__main__":
    key = jax.random.PRNGKey(0)
    kx, kp = jax.random.split(key)

    # NONLocalBlock2D: in_channels=64 -> inter_channels=32, sub_sample=True.
    B, C, H, W = 2, 64, 16, 16
    x = jax.random.normal(kx, (B, C, H, W), jnp.float32)
    params = init_params(kp, C, C // 2)

    fwd = jax.jit(nonlocal_block_forward)
    z = jax.block_until_ready(fwd(x, params))
    z_ref = jax.block_until_ready(nonlocal_ref(x, params))

    assert z.shape == (B, C, H, W)
    assert bool(jnp.all(jnp.isfinite(z)))
    max_err = float(jnp.max(jnp.abs(z - z_ref)))
    assert max_err < 2e-2, f"max abs err {max_err}"
    print("KERNEL_OK")
</pallas_src>

<mosaic_0001>
module attributes {stable_mosaic.version = 11 : i64} {
  func.func @_nonlocal_kernel(%arg0: i32, %arg1: memref<1x256x64xf32, #tpu.memory_space<vmem>>, %arg2: memref<64x32xbf16, #tpu.memory_space<vmem>>, %arg3: memref<64x32xbf16, #tpu.memory_space<vmem>>, %arg4: memref<64x32xbf16, #tpu.memory_space<vmem>>, %arg5: memref<1x32xf32, #tpu.memory_space<vmem>>, %arg6: memref<1x32xf32, #tpu.memory_space<vmem>>, %arg7: memref<1x32xf32, #tpu.memory_space<vmem>>, %arg8: memref<32x64xbf16, #tpu.memory_space<vmem>>, %arg9: memref<1x64xf32, #tpu.memory_space<vmem>>, %arg10: memref<1x64xf32, #tpu.memory_space<vmem>>, %arg11: memref<1x256x64xf32, #tpu.memory_space<vmem>>) attributes {dimension_semantics = [#tpu.dimension_semantics<parallel>], iteration_bounds = array<i64: 2>, scalar_prefetch = 0 : i64, scratch_operands = 0 : i64, tpu.core_type = #tpu.core_type<tc>, window_params = [{transform_indices = @transform_0, window_bounds = array<i64: 1, 256, 64>}, {pipeline_mode = #tpu.pipeline_mode<synchronous>, transform_indices = @transform_1, window_bounds = array<i64: 64, 32>}, {pipeline_mode = #tpu.pipeline_mode<synchronous>, transform_indices = @transform_2, window_bounds = array<i64: 64, 32>}, {pipeline_mode = #tpu.pipeline_mode<synchronous>, transform_indices = @transform_3, window_bounds = array<i64: 64, 32>}, {pipeline_mode = #tpu.pipeline_mode<synchronous>, transform_indices = @transform_4, window_bounds = array<i64: 1, 32>}, {pipeline_mode = #tpu.pipeline_mode<synchronous>, transform_indices = @transform_5, window_bounds = array<i64: 1, 32>}, {pipeline_mode = #tpu.pipeline_mode<synchronous>, transform_indices = @transform_6, window_bounds = array<i64: 1, 32>}, {pipeline_mode = #tpu.pipeline_mode<synchronous>, transform_indices = @transform_7, window_bounds = array<i64: 32, 64>}, {pipeline_mode = #tpu.pipeline_mode<synchronous>, transform_indices = @transform_8, window_bounds = array<i64: 1, 64>}, {pipeline_mode = #tpu.pipeline_mode<synchronous>, transform_indices = @transform_9, window_bounds = array<i64: 1, 64>}, {transform_indices = @transform_10, window_bounds = array<i64: 1, 256, 64>}]} {
    %c0 = arith.constant 0 : index
    %c0_0 = arith.constant 0 : index
    %c0_1 = arith.constant 0 : index
    %0 = vector.load %arg1[%c0, %c0_0, %c0_1] : memref<1x256x64xf32, #tpu.memory_space<vmem>>, vector<1x256x64xf32>
    %1 = vector.shape_cast %0 : vector<1x256x64xf32> to vector<256x64xf32>
    %2 = arith.truncf %1 : vector<256x64xf32> to vector<256x64xbf16>
    %c0_2 = arith.constant 0 : index
    %c0_3 = arith.constant 0 : index
    %3 = vector.load %arg2[%c0_2, %c0_3] : memref<64x32xbf16, #tpu.memory_space<vmem>>, vector<64x32xbf16>
    %cst = arith.constant dense<0.000000e+00> : vector<256x32xf32>
    %4 = tpu.matmul %2, %3, %cst {dimension_numbers = #tpu.dot_dimension_numbers<[1], [0], [0], [1], [0, 0, 1, 1], [], []>} : vector<256x64xbf16>, vector<64x32xbf16>, vector<256x32xf32> -> vector<256x32xf32>
    %c0_4 = arith.constant 0 : index
    %c0_5 = arith.constant 0 : index
    %5 = vector.load %arg5[%c0_4, %c0_5] : memref<1x32xf32, #tpu.memory_space<vmem>>, vector<1x32xf32>
    %6 = vector.broadcast %5 : vector<1x32xf32> to vector<256x32xf32>
    %7 = arith.addf %4, %6 : vector<256x32xf32>
    %8 = vector.extract_strided_slice %2 {offsets = [0, 0], sizes = [64, 64], strides = [1, 1]} : vector<256x64xbf16> to vector<64x64xbf16>
    %c0_6 = arith.constant 0 : index
    %c0_7 = arith.constant 0 : index
    %9 = vector.load %arg3[%c0_6, %c0_7] : memref<64x32xbf16, #tpu.memory_space<vmem>>, vector<64x32xbf16>
    %cst_8 = arith.constant dense<0.000000e+00> : vector<64x32xf32>
    %10 = tpu.matmul %8, %9, %cst_8 {dimension_numbers = #tpu.dot_dimension_numbers<[1], [0], [0], [1], [0, 0, 1, 1], [], []>} : vector<64x64xbf16>, vector<64x32xbf16>, vector<64x32xf32> -> vector<64x32xf32>
    %11 = vector.extract_strided_slice %2 {offsets = [64, 0], sizes = [64, 64], strides = [1, 1]} : vector<256x64xbf16> to vector<64x64xbf16>
    %c0_9 = arith.constant 0 : index
    %c0_10 = arith.constant 0 : index
    %12 = vector.load %arg3[%c0_9, %c0_10] : memref<64x32xbf16, #tpu.memory_space<vmem>>, vector<64x32xbf16>
    %cst_11 = arith.constant dense<0.000000e+00> : vector<64x32xf32>
    %13 = tpu.matmul %11, %12, %cst_11 {dimension_numbers = #tpu.dot_dimension_numbers<[1], [0], [0], [1], [0, 0, 1, 1], [], []>} : vector<64x64xbf16>, vector<64x32xbf16>, vector<64x32xf32> -> vector<64x32xf32>
    %14 = arith.maximumf %10, %13 : vector<64x32xf32>
    %15 = vector.extract_strided_slice %2 {offsets = [128, 0], sizes = [64, 64], strides = [1, 1]} : vector<256x64xbf16> to vector<64x64xbf16>
    %c0_12 = arith.constant 0 : index
    %c0_13 = arith.constant 0 : index
    %16 = vector.load %arg3[%c0_12, %c0_13] : memref<64x32xbf16, #tpu.memory_space<vmem>>, vector<64x32xbf16>
    %cst_14 = arith.constant dense<0.000000e+00> : vector<64x32xf32>
    %17 = tpu.matmul %15, %16, %cst_14 {dimension_numbers = #tpu.dot_dimension_numbers<[1], [0], [0], [1], [0, 0, 1, 1], [], []>} : vector<64x64xbf16>, vector<64x32xbf16>, vector<64x32xf32> -> vector<64x32xf32>
    %18 = arith.maximumf %14, %17 : vector<64x32xf32>
    %19 = vector.extract_strided_slice %2 {offsets = [192, 0], sizes = [64, 64], strides = [1, 1]} : vector<256x64xbf16> to vector<64x64xbf16>
    %c0_15 = arith.constant 0 : index
    %c0_16 = arith.constant 0 : index
    %20 = vector.load %arg3[%c0_15, %c0_16] : memref<64x32xbf16, #tpu.memory_space<vmem>>, vector<64x32xbf16>
    %cst_17 = arith.constant dense<0.000000e+00> : vector<64x32xf32>
    %21 = tpu.matmul %19, %20, %cst_17 {dimension_numbers = #tpu.dot_dimension_numbers<[1], [0], [0], [1], [0, 0, 1, 1], [], []>} : vector<64x64xbf16>, vector<64x32xbf16>, vector<64x32xf32> -> vector<64x32xf32>
    %22 = arith.maximumf %18, %21 : vector<64x32xf32>
    %c0_18 = arith.constant 0 : index
    %c0_19 = arith.constant 0 : index
    %23 = vector.load %arg6[%c0_18, %c0_19] : memref<1x32xf32, #tpu.memory_space<vmem>>, vector<1x32xf32>
    %24 = vector.broadcast %23 : vector<1x32xf32> to vector<64x32xf32>
    %25 = arith.addf %22, %24 : vector<64x32xf32>
    %26 = vector.extract_strided_slice %2 {offsets = [0, 0], sizes = [64, 64], strides = [1, 1]} : vector<256x64xbf16> to vector<64x64xbf16>
    %c0_20 = arith.constant 0 : index
    %c0_21 = arith.constant 0 : index
    %27 = vector.load %arg4[%c0_20, %c0_21] : memref<64x32xbf16, #tpu.memory_space<vmem>>, vector<64x32xbf16>
    %cst_22 = arith.constant dense<0.000000e+00> : vector<64x32xf32>
    %28 = tpu.matmul %26, %27, %cst_22 {dimension_numbers = #tpu.dot_dimension_numbers<[1], [0], [0], [1], [0, 0, 1, 1], [], []>} : vector<64x64xbf16>, vector<64x32xbf16>, vector<64x32xf32> -> vector<64x32xf32>
    %29 = vector.extract_strided_slice %2 {offsets = [64, 0], sizes = [64, 64], strides = [1, 1]} : vector<256x64xbf16> to vector<64x64xbf16>
    %c0_23 = arith.constant 0 : index
    %c0_24 = arith.constant 0 : index
    %30 = vector.load %arg4[%c0_23, %c0_24] : memref<64x32xbf16, #tpu.memory_space<vmem>>, vector<64x32xbf16>
    %cst_25 = arith.constant dense<0.000000e+00> : vector<64x32xf32>
    %31 = tpu.matmul %29, %30, %cst_25 {dimension_numbers = #tpu.dot_dimension_numbers<[1], [0], [0], [1], [0, 0, 1, 1], [], []>} : vector<64x64xbf16>, vector<64x32xbf16>, vector<64x32xf32> -> vector<64x32xf32>
    %32 = arith.maximumf %28, %31 : vector<64x32xf32>
    %33 = vector.extract_strided_slice %2 {offsets = [128, 0], sizes = [64, 64], strides = [1, 1]} : vector<256x64xbf16> to vector<64x64xbf16>
    %c0_26 = arith.constant 0 : index
    %c0_27 = arith.constant 0 : index
    %34 = vector.load %arg4[%c0_26, %c0_27] : memref<64x32xbf16, #tpu.memory_space<vmem>>, vector<64x32xbf16>
    %cst_28 = arith.constant dense<0.000000e+00> : vector<64x32xf32>
    %35 = tpu.matmul %33, %34, %cst_28 {dimension_numbers = #tpu.dot_dimension_numbers<[1], [0], [0], [1], [0, 0, 1, 1], [], []>} : vector<64x64xbf16>, vector<64x32xbf16>, vector<64x32xf32> -> vector<64x32xf32>
    %36 = arith.maximumf %32, %35 : vector<64x32xf32>
    %37 = vector.extract_strided_slice %2 {offsets = [192, 0], sizes = [64, 64], strides = [1, 1]} : vector<256x64xbf16> to vector<64x64xbf16>
    %c0_29 = arith.constant 0 : index
    %c0_30 = arith.constant 0 : index
    %38 = vector.load %arg4[%c0_29, %c0_30] : memref<64x32xbf16, #tpu.memory_space<vmem>>, vector<64x32xbf16>
    %cst_31 = arith.constant dense<0.000000e+00> : vector<64x32xf32>
    %39 = tpu.matmul %37, %38, %cst_31 {dimension_numbers = #tpu.dot_dimension_numbers<[1], [0], [0], [1], [0, 0, 1, 1], [], []>} : vector<64x64xbf16>, vector<64x32xbf16>, vector<64x32xf32> -> vector<64x32xf32>
    %40 = arith.maximumf %36, %39 : vector<64x32xf32>
    %c0_32 = arith.constant 0 : index
    %c0_33 = arith.constant 0 : index
    %41 = vector.load %arg7[%c0_32, %c0_33] : memref<1x32xf32, #tpu.memory_space<vmem>>, vector<1x32xf32>
    %42 = vector.broadcast %41 : vector<1x32xf32> to vector<64x32xf32>
    %43 = arith.addf %40, %42 : vector<64x32xf32>
    %44 = arith.truncf %7 : vector<256x32xf32> to vector<256x32xbf16>
    %45 = arith.truncf %25 : vector<64x32xf32> to vector<64x32xbf16>
    %cst_34 = arith.constant dense<0.000000e+00> : vector<256x64xf32>
    %46 = tpu.matmul %44, %45, %cst_34 {dimension_numbers = #tpu.dot_dimension_numbers<[1], [1], [0], [0], [0, 0, 1, 0], [], []>} : vector<256x32xbf16>, vector<64x32xbf16>, vector<256x64xf32> -> vector<256x64xf32>
    %cst_35 = arith.constant dense<0xFF800000> : vector<256xf32>
    %47 = vector.multi_reduction <maximumf>, %46, %cst_35 [1] : vector<256x64xf32> to vector<256xf32>
    %48 = vector.shape_cast %47 : vector<256xf32> to vector<256x1xf32>
    %49 = vector.broadcast %48 : vector<256x1xf32> to vector<256x64xf32>
    %50 = arith.subf %46, %49 : vector<256x64xf32>
    %51 = math.exp %50 : vector<256x64xf32>
    %cst_36 = arith.constant dense<0.000000e+00> : vector<256xf32>
    %52 = vector.multi_reduction <add>, %51, %cst_36 [1] : vector<256x64xf32> to vector<256xf32>
    %53 = vector.shape_cast %52 : vector<256xf32> to vector<256x1xf32>
    %54 = vector.broadcast %53 : vector<256x1xf32> to vector<256x64xf32>
    %55 = arith.divf %51, %54 : vector<256x64xf32>
    %56 = arith.truncf %55 : vector<256x64xf32> to vector<256x64xbf16>
    %57 = arith.truncf %43 : vector<64x32xf32> to vector<64x32xbf16>
    %cst_37 = arith.constant dense<0.000000e+00> : vector<256x32xf32>
    %58 = tpu.matmul %56, %57, %cst_37 {dimension_numbers = #tpu.dot_dimension_numbers<[1], [0], [0], [1], [0, 0, 1, 1], [], []>} : vector<256x64xbf16>, vector<64x32xbf16>, vector<256x32xf32> -> vector<256x32xf32>
    %59 = arith.truncf %58 : vector<256x32xf32> to vector<256x32xbf16>
    %c0_38 = arith.constant 0 : index
    %c0_39 = arith.constant 0 : index
    %60 = vector.load %arg8[%c0_38, %c0_39] : memref<32x64xbf16, #tpu.memory_space<vmem>>, vector<32x64xbf16>
    %cst_40 = arith.constant dense<0.000000e+00> : vector<256x64xf32>
    %61 = tpu.matmul %59, %60, %cst_40 {dimension_numbers = #tpu.dot_dimension_numbers<[1], [0], [0], [1], [0, 0, 1, 1], [], []>} : vector<256x32xbf16>, vector<32x64xbf16>, vector<256x64xf32> -> vector<256x64xf32>
    %c0_41 = arith.constant 0 : index
    %c0_42 = arith.constant 0 : index
    %62 = vector.load %arg9[%c0_41, %c0_42] : memref<1x64xf32, #tpu.memory_space<vmem>>, vector<1x64xf32>
    %63 = vector.broadcast %62 : vector<1x64xf32> to vector<256x64xf32>
    %64 = arith.mulf %61, %63 : vector<256x64xf32>
    %c0_43 = arith.constant 0 : index
    %c0_44 = arith.constant 0 : index
    %65 = vector.load %arg10[%c0_43, %c0_44] : memref<1x64xf32, #tpu.memory_space<vmem>>, vector<1x64xf32>
    %66 = vector.broadcast %65 : vector<1x64xf32> to vector<256x64xf32>
    %67 = arith.addf %64, %66 : vector<256x64xf32>
    %68 = arith.addf %67, %1 : vector<256x64xf32>
    %c0_45 = arith.constant 0 : index
    %c0_46 = arith.constant 0 : index
    %c0_47 = arith.constant 0 : index
    %69 = vector.load %arg11[%c0_45, %c0_46, %c0_47] : memref<1x256x64xf32, #tpu.memory_space<vmem>>, vector<1x256x64xf32>
    %70 = vector.shape_cast %69 : vector<1x256x64xf32> to vector<256x64xf32>
    %71 = vector.shape_cast %68 : vector<256x64xf32> to vector<1x256x64xf32>
    tpu.vector_store %arg11[%c0_45, %c0_46, %c0_47], %71 {strides = array<i32>} : memref<1x256x64xf32, #tpu.memory_space<vmem>>, vector<1x256x64xf32>,
    return
  }
  func.func @transform_0(%arg0: i32) -> (i32, i32, i32) {
    %c0_i32 = arith.constant 0 : i32
    %c0_i32_0 = arith.constant 0 : i32
    %c0_i32_1 = arith.constant 0 : i32
    return %arg0, %c0_i32, %c0_i32_0 : i32, i32, i32
  }
  func.func @transform_1(%arg0: i32) -> (i32, i32) {
    %c0_i32 = arith.constant 0 : i32
    %c0_i32_0 = arith.constant 0 : i32
    %c0_i32_1 = arith.constant 0 : i32
    return %c0_i32, %c0_i32_0 : i32, i32
  }
  func.func @transform_2(%arg0: i32) -> (i32, i32) {
    %c0_i32 = arith.constant 0 : i32
    %c0_i32_0 = arith.constant 0 : i32
    %c0_i32_1 = arith.constant 0 : i32
    return %c0_i32, %c0_i32_0 : i32, i32
  }
  func.func @transform_3(%arg0: i32) -> (i32, i32) {
    %c0_i32 = arith.constant 0 : i32
    %c0_i32_0 = arith.constant 0 : i32
    %c0_i32_1 = arith.constant 0 : i32
    return %c0_i32, %c0_i32_0 : i32, i32
  }
  func.func @transform_4(%arg0: i32) -> (i32, i32) {
    %c0_i32 = arith.constant 0 : i32
    %c0_i32_0 = arith.constant 0 : i32
    %c0_i32_1 = arith.constant 0 : i32
    return %c0_i32, %c0_i32_0 : i32, i32
  }
  func.func @transform_5(%arg0: i32) -> (i32, i32) {
    %c0_i32 = arith.constant 0 : i32
    %c0_i32_0 = arith.constant 0 : i32
    %c0_i32_1 = arith.constant 0 : i32
    return %c0_i32, %c0_i32_0 : i32, i32
  }
  func.func @transform_6(%arg0: i32) -> (i32, i32) {
    %c0_i32 = arith.constant 0 : i32
    %c0_i32_0 = arith.constant 0 : i32
    %c0_i32_1 = arith.constant 0 : i32
    return %c0_i32, %c0_i32_0 : i32, i32
  }
  func.func @transform_7(%arg0: i32) -> (i32, i32) {
    %c0_i32 = arith.constant 0 : i32
    %c0_i32_0 = arith.constant 0 : i32
    %c0_i32_1 = arith.constant 0 : i32
    return %c0_i32, %c0_i32_0 : i32, i32
  }
  func.func @transform_8(%arg0: i32) -> (i32, i32) {
    %c0_i32 = arith.constant 0 : i32
    %c0_i32_0 = arith.constant 0 : i32
    %c0_i32_1 = arith.constant 0 : i32
    return %c0_i32, %c0_i32_0 : i32, i32
  }
  func.func @transform_9(%arg0: i32) -> (i32, i32) {
    %c0_i32 = arith.constant 0 : i32
    %c0_i32_0 = arith.constant 0 : i32
    %c0_i32_1 = arith.constant 0 : i32
    return %c0_i32, %c0_i32_0 : i32, i32
  }
  func.func @transform_10(%arg0: i32) -> (i32, i32, i32) {
    %c0_i32 = arith.constant 0 : i32
    %c0_i32_0 = arith.constant 0 : i32
    %c0_i32_1 = arith.constant 0 : i32
    return %arg0, %c0_i32, %c0_i32_0 : i32, i32, i32
  }
}

</mosaic_0001>

<bundles_post_ra>
// kernel: nonlocal_block_forward.1
= control target key start
LH: loop header
LB: loop body
LE: loop exit
PB: predicated region body
PF: predicated region fallthrough
CT: control target
= control target key end

     0   :  { %s3392_s13 = smov 0   ;;  %s4410_s0 = inlined_call_operand.vmem [shape: f32[2,256,64], index: 0, kind: input, shape index: {}]   ;;  %s4411_s1 = inlined_call_operand.vmem [shape: bf16[64,32], index: 1, kind: input, shape index: {}]   ;;  %s4412_s2 = inlined_call_operand.vmem [shape: bf16[64,32], index: 2, kind: input, shape index: {}]   ;;  %s4413_s3 = inlined_call_operand.vmem [shape: bf16[64,32], index: 3, kind: input, shape index: {}]   ;;  %s4414_s4 = inlined_call_operand.vmem [shape: f32[1,32], index: 4, kind: input, shape index: {}]   ;;  %s4415_s5 = inlined_call_operand.vmem [shape: f32[1,32], index: 5, kind: input, shape index: {}]   ;;  %s4416_s6 = inlined_call_operand.vmem [shape: f32[1,32], index: 6, kind: input, shape index: {}]   ;;  %s4417_s7 = inlined_call_operand.vmem [shape: bf16[32,64], index: 7, kind: input, shape index: {}]   ;;  %s4418_s8 = inlined_call_operand.vmem [shape: f32[1,64], index: 8, kind: input, shape index: {}]   ;;  %s4419_s9 = inlined_call_operand.vmem [shape: f32[1,64], index: 9, kind: input, shape index: {}]   ;;  %s4420_s10 = inlined_call_operand.vmem [shape: f32[2,256,64], index: 10, kind: output, shape index: {}]  }
   0x1 LB: > { %s2581_s14 = sadd.s32 4294967295, %s3335_s13   ;;  %p2585_p0 = scmp.ge.s32.totalorder %s3335_s13, 1  ;;  %s3335_s13 = sphi %s3392_s13, %s20_s13  }
   0x2   : > { %p312_p1 = scmp.lt.s32.totalorder %s3335_s13, 3 }
   0x4   : > { %p313_p2 = pnand %p2585_p0, %p312_p1 }
   0x5   : > { %v3403_v0 = vld [vmem:[%s4412_s2] sm:$0xff] (!%p313_p2)   ;;  %p350_p3 = scmp.lt.s32.totalorder (!%p313_p2), %s2581_s14, 1  ;;  %v3408_v1 = vld [vmem:[%s4412_s2 + $0x8] sm:$0xff] (!%p313_p2)   ;;  %v3417_v2 = vld [vmem:[%s4412_s2 + $0x10] sm:$0xff] (!%p313_p2)   ;;  %vm448_vm0 = vcmask (!%p313_p2), 523264   ;;  %vm1340_vm1 = vcmask (!%p313_p2), 261120  }
   0x6   : > { %316 = sbr.rel (%p313_p2) target bundleno = 1357 (0x54d), region = 60  ;;  %2891 = vmatprep.subr.bf16.mxu1 (!%p313_p2), %v3403_v0  ;;  %v3159_v3 = vld [vmem:[%s4411_s1] sm:$0xff] (!%p313_p2)   ;;  %v3160_v4 = vld [vmem:[%s4411_s1 + $0x8] sm:$0xff] (!%p313_p2)   ;;  %v3443_v8 = vld [vmem:[%s4412_s2 + $0x18] sm:$0xff] (!%p313_p2)  }
   0x7   : > { %2892 = vmatpush3.bf16.msra.mxu1 (!%p313_p2), %v3403_v0  ;;  %2851 = vmatprep.subr.bf16.mxu0 (!%p313_p2), %v3159_v3  ;;  %v3161_v17 = vld [vmem:[%s4411_s1 + $0x10] sm:$0xff] (!%p313_p2)   ;;  %v3162_v19 = vld [vmem:[%s4411_s1 + $0x18] sm:$0xff] (!%p313_p2)   ;;  %v3480_v21 = vld [vmem:[%s4413_s3] sm:$0xff] (!%p313_p2)  }
   0x8   : > { %2893 = vmatprep.subr.bf16.mxu1 (!%p313_p2), %v3408_v1  ;;  %2852 = vmatpush3.bf16.msra.mxu0 (!%p313_p2), %v3159_v3  ;;  %v3494_v24 = vld [vmem:[%s4413_s3 + $0x8] sm:$0xff] (!%p313_p2)   ;;  %v3165_v58 = vld [vmem:[%s4413_s3 + $0x10] sm:$0xff] (!%p313_p2)   ;;  %v3166_v59 = vld [vmem:[%s4413_s3 + $0x18] sm:$0xff] (!%p313_p2)  }
   0x9   : > { %2853 = vmatprep.subr.bf16.mxu0 (!%p313_p2), %v3160_v4 }
   0xb   : > { %2894 = vmatpush3.bf16.msra.mxu1 (!%p313_p2), %v3408_v1 }
   0xc   : > { %2895 = vmatprep.subr.bf16.mxu1 (!%p313_p2), %v3417_v2  ;;  %2854 = vmatpush3.bf16.msra.mxu0 (!%p313_p2), %v3160_v4 }
   0xd   : > { %s4422_s14 = smov (!%p350_p3, %s2581_s14), 1  ;;  %2855 = vmatprep.subr.bf16.mxu0 %v3161_v17 }
   0xe   : > { %s2707_s21 = sshll.u32 %s4422_s14, 8 }
   0xf   : > { %s3429_s26 = scalar_lea.vmem %s4410_s0, %s2707_s21  ;;  %2896 = vmatpush3.bf16.msra.mxu1 %v3417_v2  ;;  %s4249_s27 = scalar_lea.vmem %s4420_s10, %s2707_s21 }
  0x10   : > { %v361_v5 = vld [vmem:[%s3429_s26] sm:$0xff]  ;;  %v362_v6 = vld [vmem:[%s3429_s26 + $0x8] sm:$0xff]  ;;  %v363_v9 = vld [vmem:[%s3429_s26 + $0x10] sm:$0xff]  ;;  %2897 = vmatprep.subr.bf16.mxu1 %v3443_v8  ;;  %2856 = vmatpush3.bf16.msra.mxu0 %v3161_v17 }
  0x11   : > { %v3437_v7 = vpack.c.bf16 %v362_v6, %v361_v5  ;;  %v364_v10 = vld [vmem:[%s3429_s26 + $0x18] sm:$0xff]  ;;  %v365_v11 = vld [vmem:[%s3429_s26 + $0x20] sm:$0xff]  ;;  %v366_v12 = vld [vmem:[%s3429_s26 + $0x28] sm:$0xff]  ;;  %2857 = vmatprep.subr.bf16.mxu0 %v3162_v19 }
  0x12   : > { %v3455_v13 = vpack.c.bf16 %v364_v10, %v363_v9  ;;  %v3458_v14 = vpack.c.bf16 %v366_v12, %v365_v11  ;;  %v367_v15 = vld [vmem:[%s3429_s26 + $0x30] sm:$0xff]  ;;  %v368_v16 = vld [vmem:[%s3429_s26 + $0x38] sm:$0xff]  ;;  %v369_v18 = vld [vmem:[%s3429_s26 + $0x40] sm:$0xff] }
  0x13   : > { %2899 = vmatprep.mubr.msk.bf16.mxu1 %vm448_vm0, %v3437_v7  ;;  %2859 = vmatprep.mubr.msk.bf16.mxu0 %vm448_vm0, %v3437_v7  ;;  %v370_v20 = vld [vmem:[%s3429_s26 + $0x48] sm:$0xff]  ;;  %v3482_v22 = vpack.c.bf16 %v368_v16, %v367_v15  ;;  %v371_v25 = vld [vmem:[%s3429_s26 + $0x50] sm:$0xff]  ;;  %v372_v26 = vld [vmem:[%s3429_s26 + $0x58] sm:$0xff] }
  0x14   : > { %2898 = vmatpush3.bf16.msra.mxu1 %v3443_v8  ;;  %v3485_v23 = vpack.c.bf16 %v370_v20, %v369_v18  ;;  %2858 = vmatpush3.bf16.msra.mxu0 %v3162_v19  ;;  %v373_v27 = vld [vmem:[%s3429_s26 + $0x60] sm:$0xff]  ;;  %v374_v28 = vld [vmem:[%s3429_s26 + $0x68] sm:$0xff]  ;;  %v3509_v29 = vpack.c.bf16 %v372_v26, %v371_v25  ;;  %v375_v31 = vld [vmem:[%s3429_s26 + $0x70] sm:$0xff] }
  0x15   : > { %2907 = vmatprep.subr.bf16.mxu1 %v3403_v0  ;;  %2955 = vmatprep.subr.bf16.mxu0 %v3480_v21  ;;  %v3513_v30 = vpack.c.bf16 %v374_v28, %v373_v27  ;;  %v376_v32 = vld [vmem:[%s3429_s26 + $0x78] sm:$0xff]  ;;  %v377_v33 = vld [vmem:[%s3429_s26 + $0x80] sm:$0xff]  ;;  %v378_v34 = vld [vmem:[%s3429_s26 + $0x88] sm:$0xff] }
  0x16   : > { %v3531_v35 = vpack.c.bf16 %v376_v32, %v375_v31  ;;  %v3534_v36 = vpack.c.bf16 %v378_v34, %v377_v33  ;;  %v379_v37 = vld [vmem:[%s3429_s26 + $0x90] sm:$0xff]  ;;  %v380_v38 = vld [vmem:[%s3429_s26 + $0x98] sm:$0xff]  ;;  %v381_v39 = vld [vmem:[%s3429_s26 + $0xa0] sm:$0xff] }
  0x17   : > { %2900 = vmatmul.mubr.msk.bf16.vlgmr.msra.gmra.mrb[0].mxu1 %vm448_vm0, %v3455_v13  ;;  %2860 = vmatmul.mubr.msk.bf16.vlgmr.msra.gmra.mrb[0].mxu0 %vm448_vm0, %v3455_v13  ;;  %v382_v40 = vld [vmem:[%s3429_s26 + $0xa8] sm:$0xff]  ;;  %v3551_v41 = vpack.c.bf16 %v380_v38, %v379_v37  ;;  %v383_v43 = vld [vmem:[%s3429_s26 + $0xb0] sm:$0xff]  ;;  %v384_v44 = vld [vmem:[%s3429_s26 + $0xb8] sm:$0xff] }
  0x18   : > { %2908 = vmatpush3.bf16.msra.mxu1 %v3403_v0  ;;  %2903 = vmatprep.mubr.msk.bf16.mxu1 %vm448_vm0, %v3458_v14  ;;  %v3554_v42 = vpack.c.bf16 %v382_v40, %v381_v39  ;;  %v385_v45 = vld [vmem:[%s3429_s26 + $0xc0] sm:$0xff]  ;;  %v386_v46 = vld [vmem:[%s3429_s26 + $0xc8] sm:$0xff]  ;;  %v3571_v47 = vpack.c.bf16 %v384_v44, %v383_v43  ;;  %v387_v49 = vld [vmem:[%s3429_s26 + $0xd0] sm:$0xff] }
  0x19   : > { %2909 = vmatprep.subr.bf16.mxu1 %v3408_v1  ;;  %2863 = vmatprep.mubr.msk.bf16.mxu0 %vm448_vm0, %v3458_v14  ;;  %v3574_v48 = vpack.c.bf16 %v386_v46, %v385_v45  ;;  %v388_v50 = vld [vmem:[%s3429_s26 + $0xd8] sm:$0xff]  ;;  %v389_v51 = vld [vmem:[%s3429_s26 + $0xe0] sm:$0xff]  ;;  %v390_v52 = vld [vmem:[%s3429_s26 + $0xe8] sm:$0xff] }
  0x1a   : > { %2956 = vmatpush3.bf16.msra.mxu0 %v3480_v21  ;;  %v406_v53 = vpack.c.bf16 %v388_v50, %v387_v49  ;;  %v407_v54 = vpack.c.bf16 %v390_v52, %v389_v51  ;;  %v391_v55 = vld [vmem:[%s3429_s26 + $0xf0] sm:$0xff]  ;;  %v392_v56 = vld [vmem:[%s3429_s26 + $0xf8] sm:$0xff] }
  0x1b   : > { %2957 = vmatprep.subr.bf16.mxu0 %v3494_v24  ;;  %v408_v57 = vpack.c.bf16 %v392_v56, %v391_v55 }
  0x1c   : > { %2910 = vmatpush3.bf16.msra.mxu1 %v3408_v1 }
  0x1d   : > { %2911 = vmatprep.subr.bf16.mxu1 %v3417_v2 }
  0x1e   : > { %2958 = vmatpush3.bf16.msra.mxu0 %v3494_v24 }
  0x1f   : > { %2904 = vmatmul.mubr.msk.bf16.gmra.mrb[4].mxu1 %vm448_vm0, %v3482_v22  ;;  %2864 = vmatmul.mubr.msk.bf16.gmra.mrb[4].mxu0 %vm448_vm0, %v3482_v22 }
  0x20   : > { %2912 = vmatpush3.bf16.msra.mxu1 %v3417_v2  ;;  %2915 = vmatprep.mubr.msk.bf16.mxu1 %vm448_vm0, %v3485_v23 }
  0x21   : > { %2913 = vmatprep.subr.bf16.mxu1 %v3443_v8  ;;  %2867 = vmatprep.mubr.msk.bf16.mxu0 %vm448_vm0, %v3485_v23 }
  0x22   : > { %2959 = vmatprep.subr.bf16.mxu0 %v3165_v58 }
  0x23   : > { %2960 = vmatpush3.bf16.msra.mxu0 %v3165_v58 }
  0x24   : > { %2914 = vmatpush3.bf16.msra.mxu1 %v3443_v8  ;;  %2961 = vmatprep.subr.bf16.mxu0 %v3166_v59 }
  0x25   : > { %2923 = vmatprep.subr.bf16.mxu1 %v3403_v0 }
  0x27   : > { %2916 = vmatmul.mubr.msk.bf16.vlgmr.msra.gmra.mrb[8].mxu1 %vm448_vm0, %v3509_v29  ;;  %2868 = vmatmul.mubr.msk.bf16.gmra.mrb[8].mxu0 %vm448_vm0, %v3509_v29 }
  0x28   : > { %2924 = vmatpush3.bf16.msra.mxu1 %v3403_v0  ;;  %2919 = vmatprep.mubr.msk.bf16.mxu1 %vm448_vm0, %v3513_v30 }
  0x29   : > { %2925 = vmatprep.subr.bf16.mxu1 %v3408_v1  ;;  %2871 = vmatprep.mubr.msk.bf16.mxu0 %vm448_vm0, %v3513_v30 }
  0x2a   : > { %2962 = vmatpush3.bf16.msra.mxu0 %v3166_v59 }
  0x2b   : > { %2987 = vmatprep.subr.bf16.mxu0 %v3480_v21 }
  0x2c   : > { %2926 = vmatpush3.bf16.msra.mxu1 %v3408_v1 }
  0x2d   : > { %2927 = vmatprep.subr.bf16.mxu1 %v3417_v2 }
  0x2f   : > { %2920 = vmatmul.mubr.msk.bf16.gmra.mrb[12].mxu1 %vm448_vm0, %v3531_v35  ;;  %2872 = vmatmul.mubr.msk.bf16.gmra.mrb[12].mxu0 %vm448_vm0, %v3531_v35 }
  0x30   : > { %2928 = vmatpush3.bf16.msra.mxu1 %v3417_v2  ;;  %2931 = vmatprep.mubr.msk.bf16.mxu1 %vm448_vm0, %v3534_v36 }
  0x31   : > { %2929 = vmatprep.subr.bf16.mxu1 %v3443_v8  ;;  %2875 = vmatprep.mubr.msk.bf16.mxu0 %vm448_vm0, %v3534_v36 }
  0x34   : > { %2930 = vmatpush3.bf16.msra.mxu1 %v3443_v8 }
  0x35   : > { %2939 = vmatprep.subr.bf16.mxu1 %v3403_v0 }
  0x37   : > { %2932 = vmatmul.mubr.msk.bf16.vlgmr.msra.gmra.mrb[16].mxu1 %vm448_vm0, %v3551_v41  ;;  %2876 = vmatmul.mubr.msk.bf16.gmra.mrb[16].mxu0 %vm448_vm0, %v3551_v41 }
  0x38   : > { %2940 = vmatpush3.bf16.msra.mxu1 %v3403_v0  ;;  %2935 = vmatprep.mubr.msk.bf16.mxu1 %vm448_vm0, %v3554_v42 }
  0x39   : > { %2941 = vmatprep.subr.bf16.mxu1 %v3408_v1  ;;  %2879 = vmatprep.mubr.msk.bf16.mxu0 %vm448_vm0, %v3554_v42 }
  0x3c   : > { %2942 = vmatpush3.bf16.msra.mxu1 %v3408_v1  ;;  %v3658_v1 = vld [vmem:[%s4414_s4] ss:$0 sm:$0xff] }
  0x3d   : > { %2943 = vmatprep.subr.bf16.mxu1 %v3417_v2 }
  0x3f   : > { %2936 = vmatmul.mubr.msk.bf16.gmra.mrb[20].mxu1 %vm448_vm0, %v3571_v47  ;;  %2880 = vmatmul.mubr.msk.bf16.gmra.mrb[20].mxu0 %vm448_vm0, %v3571_v47 }
  0x40   : > { %2944 = vmatpush3.bf16.msra.mxu1 %v3417_v2  ;;  %2947 = vmatprep.mubr.msk.bf16.mxu1 %vm448_vm0, %v3574_v48 }
  0x41   : > { %2945 = vmatprep.subr.bf16.mxu1 %v3443_v8  ;;  %2883 = vmatprep.mubr.msk.bf16.mxu0 %vm448_vm0, %v3574_v48 }
  0x44   : > { %2946 = vmatpush3.bf16.msra.mxu1 %v3443_v8 }
  0x45   : > { %2971 = vmatprep.subr.bf16.mxu1 %v3480_v21 }
  0x47   : > { %2948 = vmatmul.mubr.msk.bf16.vlgmr.msra.gmra.mrb[24].mxu1 %vm448_vm0, %v406_v53  ;;  %2884 = vmatmul.mubr.msk.bf16.gmra.mrb[24].mxu0 %vm448_vm0, %v406_v53 }
  0x48   : > { %2951 = vmatprep.mubr.msk.bf16.mxu1 %vm448_vm0, %v407_v54  ;;  %2972 = vmatpush3.bf16.msra.mxu1 %v3480_v21 }
  0x49   : > { %2973 = vmatprep.subr.bf16.mxu1 %v3494_v24  ;;  %2887 = vmatprep.mubr.msk.bf16.mxu0 %vm448_vm0, %v407_v54 }
  0x4c   : > { %2974 = vmatpush3.bf16.msra.mxu1 %v3494_v24 }
  0x4d   : > { %2975 = vmatprep.subr.bf16.mxu1 %v3165_v58 }
  0x4f   : > { %2952 = vmatmul.mubr.msk.bf16.gmra.mrb[28].mxu1 %vm448_vm0, %v408_v57  ;;  %2888 = vmatmul.mubr.msk.bf16.gmra.mrb[28].mxu0 %vm448_vm0, %v408_v57 }
  0x50   : > { %2979 = vmatprep.mubr.msk.bf16.mxu1 %vm448_vm0, %v3485_v23  ;;  %2963 = vmatprep.mubr.msk.bf16.mxu0 %vm448_vm0, %v3437_v7 }
  0x51   : > { %2976 = vmatpush3.bf16.msra.mxu1 %v3165_v58 }
  0x52   : > { %2977 = vmatprep.subr.bf16.mxu1 %v3166_v59 }
  0x55   : > { %2978 = vmatpush3.bf16.msra.mxu1 %v3166_v59 }
  0x56   : > { %3003 = vmatprep.subr.bf16.mxu1 %v3480_v21 }
  0x57   : > { %2964 = vmatmul.mubr.msk.bf16.vlgmr.msra.gmra.mrb[32].mxu0 %vm448_vm0, %v3455_v13 }
  0x58   : > { %2980 = vmatmul.mubr.msk.bf16.vlgmr.msra.gmra.mrb[32].mxu1 %vm448_vm0, %v3509_v29  ;;  %2988 = vmatpush3.bf16.msra.mxu0 %v3480_v21 }
  0x59   : > { %3004 = vmatpush3.bf16.msra.mxu1 %v3480_v21  ;;  %2989 = vmatprep.subr.bf16.mxu0 %v3494_v24 }
  0x5a   : > { %3005 = vmatprep.subr.bf16.mxu1 %v3494_v24  ;;  %2967 = vmatprep.mubr.msk.bf16.mxu0 %vm448_vm0, %v3458_v14 }
  0x5b   : > { %2983 = vmatprep.mubr.msk.bf16.mxu1 %vm448_vm0, %v3513_v30 }
  0x5c   : > { %2990 = vmatpush3.bf16.msra.mxu0 %v3494_v24 }
  0x5d   : > { %3006 = vmatpush3.bf16.msra.mxu1 %v3494_v24  ;;  %2991 = vmatprep.subr.bf16.mxu0 %v3165_v58 }
  0x5e   : > { %3007 = vmatprep.subr.bf16.mxu1 %v3165_v58 }
  0x5f   : > { %2968 = vmatmul.mubr.msk.bf16.gmra.mrb[36].mxu0 %vm448_vm0, %v3482_v22 }
  0x60   : > { %2984 = vmatmul.mubr.msk.bf16.gmra.mrb[36].mxu1 %vm448_vm0, %v3531_v35  ;;  %2992 = vmatpush3.bf16.msra.mxu0 %v3165_v58 }
  0x61   : > { %3008 = vmatpush3.bf16.msra.mxu1 %v3165_v58  ;;  %2993 = vmatprep.subr.bf16.mxu0 %v3166_v59 }
  0x62   : > { %3009 = vmatprep.subr.bf16.mxu1 %v3166_v59  ;;  %2995 = vmatprep.mubr.msk.bf16.mxu0 %vm448_vm0, %v3534_v36 }
  0x63   : > { %3011 = vmatprep.mubr.msk.bf16.mxu1 %vm448_vm0, %v3574_v48 }
  0x64   : > { %2994 = vmatpush3.bf16.msra.mxu0 %v3166_v59 }
  0x65   : > { %3010 = vmatpush3.bf16.msra.mxu1 %v3166_v59 }
  0x67   : > { %2996 = vmatmul.mubr.msk.bf16.vlgmr.msra.gmra.mrb[40].mxu0 %vm448_vm0, %v3551_v41 }
  0x68   : > { %3012 = vmatmul.mubr.msk.bf16.vlgmr.msra.gmra.mrb[40].mxu1 %vm448_vm0, %v406_v53  ;;  %2999 = vmatprep.mubr.msk.bf16.mxu0 %vm448_vm0, %v3554_v42 }
  0x69   : > { %3015 = vmatprep.mubr.msk.bf16.mxu1 %vm448_vm0, %v407_v54 }
  0x6f   : > { %3000 = vmatmul.mubr.msk.bf16.gmra.mrb[44].mxu0 %vm448_vm0, %v3571_v47 }
  0x70   : > { %3016 = vmatmul.mubr.msk.bf16.gmra.mrb[44].mxu1 %vm448_vm0, %v408_v57 }
  0xea   : > { %v2901_v60 = vpop.f32.mrb[0].mxu1  ;;  %v2861_v4 = vpop.f32.mrb[0].mxu0 }
  0xeb   : > { %v724_v61 = vpop.f32.mrb[1].mxu1  ;;  %v3667_v6 = vadd.f32 %v2861_v4, %v3658_v1  ;;  %v531_v7 = vpop.f32.mrb[1].mxu0 }
  0xec   : > { %v2902_v62 = vpop.f32.mrb[2].mxu1  ;;  %v532_v8 = vadd.f32 %v3658_v1, %v531_v7  ;;  %v2862_v9 = vpop.f32.mrb[2].mxu0 }
  0xed   : > { %v3651_v63 = vpop.f32.mrb[3].mxu1  ;;  %v3671_v10 = vadd.f32 %v2862_v9, %v3658_v1  ;;  %v534_v11 = vpop.f32.mrb[3].mxu0 }
  0xee   : > { %v535_v12 = vadd.f32 %v3658_v1, %v534_v11 }
  0xef   : > { %v1321_v13 = vpack.c.bf16 %v3671_v10, %v3667_v6 }
  0xf0   : > { %v1320_v15 = vpack.c.bf16 %v535_v12, %v532_v8 }
  0xf2   : > { %v3653_v0 = vpop.f32.mrb[4].mxu1  ;;  %3027 = vmatprep.mubr.msk.bf16.mxu0 %vm1340_vm1, %v1320_v15  ;;  %v2865_v20 = vpop.f32.mrb[4].mxu0 }
  0xf3   : > { %v3660_v2 = vpop.f32.mrb[5].mxu1  ;;  %v3678_v23 = vadd.f32 %v2865_v20, %v3658_v1  ;;  %v547_v24 = vpop.f32.mrb[5].mxu0 }
  0xf4   : > { %v3662_v3 = vpop.f32.mrb[6].mxu1  ;;  %v3682_v26 = vadd.f32 %v3658_v1, %v547_v24  ;;  %v2866_v27 = vpop.f32.mrb[6].mxu0 }
  0xf5   : > { %v3664_v5 = vpop.f32.mrb[7].mxu1  ;;  %v3685_v28 = vadd.f32 %v2866_v27, %v3658_v1  ;;  %v550_v29 = vpop.f32.mrb[7].mxu0 }
  0xf6   : > { %v3688_v30 = vadd.f32 %v3658_v1, %v550_v29 }
  0xf7   : > { %v1323_v31 = vpack.c.bf16 %v3685_v28, %v3678_v23 }
  0xf8   : > { %v1322_v33 = vpack.c.bf16 %v3688_v30, %v3682_v26 }
  0xfa   : > { %v2917_v14 = vpop.f32.mrb[8].mxu1  ;;  %v2869_v38 = vpop.f32.mrb[8].mxu0 }
  0xfb   : > { %v822_v16 = vmax.f32 %v2901_v60, %v2917_v14  ;;  %v789_v17 = vpop.f32.mrb[9].mxu1  ;;  %v3698_v41 = vadd.f32 %v2869_v38, %v3658_v1  ;;  %v563_v42 = vpop.f32.mrb[9].mxu0 }
  0xfc   : > { %v820_v18 = vmax.f32 %v724_v61, %v789_v17  ;;  %v2918_v19 = vpop.f32.mrb[10].mxu1  ;;  %v3702_v44 = vadd.f32 %v3658_v1, %v563_v42  ;;  %v2870_v45 = vpop.f32.mrb[10].mxu0 }
  0xfd   : > { %v823_v21 = vmax.f32 %v2902_v62, %v2918_v19  ;;  %v792_v22 = vpop.f32.mrb[11].mxu1  ;;  %v3705_v46 = vadd.f32 %v2870_v45, %v3658_v1  ;;  %v566_v47 = vpop.f32.mrb[11].mxu0 }
  0xfe   : > { %v821_v25 = vmax.f32 %v3651_v63, %v792_v22  ;;  %v3708_v48 = vadd.f32 %v3658_v1, %v566_v47 }
  0xff   : > { %v1325_v49 = vpack.c.bf16 %v3705_v46, %v3698_v41 }
 0x100   : > { %v1324_v51 = vpack.c.bf16 %v3708_v48, %v3702_v44 }
 0x102   : > { %v2921_v32 = vpop.f32.mrb[12].mxu1  ;;  %v2873_v56 = vpop.f32.mrb[12].mxu0 }
 0x103   : > { %v826_v34 = vmax.f32 %v3653_v0, %v2921_v32  ;;  %v805_v35 = vpop.f32.mrb[13].mxu1  ;;  %v3715_v59 = vadd.f32 %v2873_v56, %v3658_v1  ;;  %v579_v60 = vpop.f32.mrb[13].mxu0 }
 0x104   : > { %v824_v36 = vmax.f32 %v3660_v2, %v805_v35  ;;  %v2922_v37 = vpop.f32.mrb[14].mxu1  ;;  %v3718_v62 = vadd.f32 %v3658_v1, %v579_v60  ;;  %v2874_v63 = vpop.f32.mrb[14].mxu0 }
 0x105   : > { %v827_v39 = vmax.f32 %v3662_v3, %v2922_v37  ;;  %v808_v40 = vpop.f32.mrb[15].mxu1  ;;  %v3721_v0 = vadd.f32 %v2874_v63, %v3658_v1  ;;  %v582_v2 = vpop.f32.mrb[15].mxu0 }
 0x106   : > { %v825_v43 = vmax.f32 %v3664_v5, %v808_v40  ;;  %v3724_v3 = vadd.f32 %v3658_v1, %v582_v2 }
 0x107   : > { %v1327_v4 = vpack.c.bf16 %v3721_v0, %v3715_v59  ;;  %v2652_v59 = vld [vmem:[%s4416_s6] ss:$0 sm:$0xff] }
 0x108   : > { %v1326_v7 = vpack.c.bf16 %v3724_v3, %v3718_v62 }
 0x10a   : > { %v2933_v50 = vpop.f32.mrb[16].mxu1  ;;  %v2877_v14 = vpop.f32.mrb[16].mxu0 }
 0x10b   : > { %v895_v52 = vmax.f32 %v822_v16, %v2933_v50  ;;  %v862_v53 = vpop.f32.mrb[17].mxu1  ;;  %v3731_v17 = vadd.f32 %v2877_v14, %v3658_v1 }
 0x10c   : > { %v893_v54 = vmax.f32 %v820_v18, %v862_v53  ;;  %v2934_v55 = vpop.f32.mrb[18].mxu1  ;;  %v595_v18 = vpop.f32.mrb[17].mxu0 }
 0x10d   : > { %v896_v57 = vmax.f32 %v823_v21, %v2934_v55  ;;  %v865_v58 = vpop.f32.mrb[19].mxu1  ;;  %v3734_v20 = vadd.f32 %v3658_v1, %v595_v18  ;;  %v2878_v21 = vpop.f32.mrb[18].mxu0 }
 0x10e   : > { %v894_v61 = vmax.f32 %v821_v25, %v865_v58  ;;  %v3737_v22 = vadd.f32 %v2878_v21, %v3658_v1  ;;  %v598_v24 = vpop.f32.mrb[19].mxu0 }
 0x10f   : > { %v3740_v25 = vadd.f32 %v3658_v1, %v598_v24 }
 0x110   : > { %v1329_v27 = vpack.c.bf16 %v3737_v22, %v3731_v17 }
 0x111   : > { %v1328_v32 = vpack.c.bf16 %v3740_v25, %v3734_v20 }
 0x112   : > { %v2937_v5 = vpop.f32.mrb[20].mxu1 }
 0x113   : > { %v899_v8 = vmax.f32 %v826_v34, %v2937_v5  ;;  %v878_v9 = vpop.f32.mrb[21].mxu1 }
 0x114   : > { %v897_v11 = vmax.f32 %v824_v36, %v878_v9  ;;  %v2938_v12 = vpop.f32.mrb[22].mxu1  ;;  %v2631_v36 = vld [vmem:[%s4415_s5] ss:$0 sm:$0xff] }
 0x115   : > { %v900_v15 = vmax.f32 %v827_v39, %v2938_v12  ;;  %v881_v16 = vpop.f32.mrb[23].mxu1  ;;  %v2881_v39 = vpop.f32.mrb[20].mxu0 }
 0x116   : > { %v898_v19 = vmax.f32 %v825_v43, %v881_v16  ;;  %v3750_v43 = vadd.f32 %v2881_v39, %v3658_v1  ;;  %v611_v45 = vpop.f32.mrb[21].mxu0 }
 0x117   : > { %v3753_v50 = vadd.f32 %v3658_v1, %v611_v45  ;;  %v2882_v53 = vpop.f32.mrb[22].mxu0 }
 0x118   : > { %v3756_v56 = vadd.f32 %v2882_v53, %v3658_v1  ;;  %v614_v58 = vpop.f32.mrb[23].mxu0 }
 0x11a   : > { %v2949_v29 = vpop.f32.mrb[24].mxu1  ;;  %v1331_v2 = vpack.c.bf16 %v3756_v56, %v3750_v43  ;;  %v2885_v24 = vpop.f32.mrb[24].mxu0 }
 0x11b   : > { %v968_v34 = vmax.f32 %v895_v52, %v2949_v29  ;;  %v935_v35 = vpop.f32.mrb[25].mxu1 }
 0x11c   : > { %v966_v37 = vmax.f32 %v893_v54, %v935_v35  ;;  %v2950_v38 = vpop.f32.mrb[26].mxu1  ;;  %v3768_v35 = vadd.f32 %v2885_v24, %v3658_v1 }
 0x11d   : > { %v969_v40 = vmax.f32 %v896_v57, %v2950_v38  ;;  %v938_v42 = vpop.f32.mrb[27].mxu1  ;;  %v983_v52 = vadd.f32 %v2631_v36, %v968_v34  ;;  %v3759_v57 = vadd.f32 %v3658_v1, %v614_v58 }
 0x11e   : > { %v967_v47 = vmax.f32 %v894_v61, %v938_v42  ;;  %v981_v54 = vadd.f32 %v2631_v36, %v966_v37  ;;  %v627_v37 = vpop.f32.mrb[25].mxu0 }
 0x11f   : > { %v984_v55 = vadd.f32 %v2631_v36, %v969_v40  ;;  %v1330_v9 = vpack.c.bf16 %v3759_v57, %v3753_v50 }
 0x120   : > { %v982_v60 = vadd.f32 %v2631_v36, %v967_v47 }
 0x121   : > { %v1337_v63 = vpack.c.bf16 %v984_v55, %v983_v52 }
 0x122   : > { %v1336_v61 = vpack.c.bf16 %v982_v60, %v981_v54  ;;  %v2953_v5 = vpop.f32.mrb[28].mxu1 }
 0x123   : > { %v972_v12 = vmax.f32 %v899_v8, %v2953_v5  ;;  %v951_v14 = vpop.f32.mrb[29].mxu1  ;;  %v3772_v8 = vadd.f32 %v3658_v1, %v627_v37  ;;  %v1393_v54 = vsel %vm1340_vm1, %v1337_v63, 0 }
 0x124   : > { %v970_v16 = vmax.f32 %v897_v11, %v951_v14  ;;  %v2954_v18 = vpop.f32.mrb[30].mxu1  ;;  %3143 = vmatprep.subr.msk.bf16.mxu0 %vm1340_vm1, %v1336_v61  ;;  %v1390_v21 = vsel %vm1340_vm1, %v1336_v61, 0  ;;  %v2886_v11 = vpop.f32.mrb[26].mxu0 }
 0x125   : > { %v973_v29 = vmax.f32 %v900_v15, %v2954_v18  ;;  %v954_v34 = vpop.f32.mrb[31].mxu1  ;;  %3020 = vmatpush3.bf16.xpose.msra.mxu0 %v1390_v21  ;;  %v987_v39 = vadd.f32 %v2631_v36, %v972_v12  ;;  %v3775_v42 = vadd.f32 %v2886_v11, %v3658_v1  ;;  %v630_v45 = vpop.f32.mrb[27].mxu0 }
 0x126   : > { %v971_v38 = vmax.f32 %v898_v19, %v954_v34  ;;  %3144 = vmatprep.subr.msk.bf16.mxu0 %vm1340_vm1, %v1337_v63  ;;  %v985_v15 = vadd.f32 %v2631_v36, %v970_v16  ;;  %v3778_v53 = vadd.f32 %v3658_v1, %v630_v45  ;;  %v2889_v60 = vpop.f32.mrb[28].mxu0 }
 0x127   : > { %v988_v40 = vadd.f32 %v2631_v36, %v973_v29  ;;  %v1333_v19 = vpack.c.bf16 %v3775_v42, %v3768_v35  ;;  %v3786_v61 = vadd.f32 %v2889_v60, %v3658_v1  ;;  %v643_v5 = vpop.f32.mrb[29].mxu0 }
 0x128   : > { %v986_v47 = vadd.f32 %v2631_v36, %v971_v38  ;;  %v1332_v58 = vpack.c.bf16 %v3778_v53, %v3772_v8  ;;  %v3790_v36 = vadd.f32 %v3658_v1, %v643_v5  ;;  %v2890_v12 = vpop.f32.mrb[30].mxu0 }
 0x129   : > { %v1339_v52 = vpack.c.bf16 %v988_v40, %v987_v39  ;;  %v3793_v14 = vadd.f32 %v2890_v12, %v3658_v1  ;;  %v646_v16 = vpop.f32.mrb[31].mxu0 }
 0x12a   : > { %v1338_v55 = vpack.c.bf16 %v986_v47, %v985_v15  ;;  %v3796_v18 = vadd.f32 %v3658_v1, %v646_v16  ;;  %v2965_v1 = vpop.f32.mrb[32].mxu0 }
 0x12b   : > { %v1335_v63 = vpack.c.bf16 %v3793_v14, %v3786_v61  ;;  %v1399_v29 = vsel %vm1340_vm1, %v1339_v52, 0  ;;  %v2981_v34 = vpop.f32.mrb[32].mxu1  ;;  %v1055_v6 = vpop.f32.mrb[33].mxu0 }
 0x12c   : > { %v1334_v21 = vpack.c.bf16 %v3796_v18, %v3790_v36  ;;  %v1396_v24 = vsel %vm1340_vm1, %v1338_v55, 0  ;;  %v1153_v10 = vmax.f32 %v2965_v1, %v2981_v34  ;;  %v2966_v37 = vpop.f32.mrb[34].mxu0 }
 0x12d   : > { %3022 = vmatpush3.bf16.xpose.msra.mxu0 %v1393_v54  ;;  %v1058_v30 = vpop.f32.mrb[35].mxu0 }
 0x12e   : > { %3145 = vmatprep.subr.msk.bf16.mxu0 %vm1340_vm1, %v1338_v55 }
 0x132   : > { %v2969_v23 = vpop.f32.mrb[36].mxu0 }
 0x135   : > { %3024 = vmatpush3.bf16.xpose.msra.mxu0 %v1396_v24 }
 0x136   : > { %3146 = vmatprep.subr.msk.bf16.mxu0 %vm1340_vm1, %v1339_v52 }
 0x13d   : > { %3026 = vmatpush3.bf16.xpose.msra.mxu0 %v1399_v29 }
 0x144   : > { %3028 = vmatmul.mubr.msk.bf16.vlgmr.msra.gmra.mrb[48].mxu0 %vm1340_vm1, %v1321_v13  ;;  %v1120_v13 = vpop.f32.mrb[33].mxu1 }
 0x145   : > { %3031 = vmatprep.mubr.msk.bf16.mxu0 %vm1340_vm1, %v1322_v33  ;;  %v1151_v38 = vmax.f32 %v1055_v6, %v1120_v13  ;;  %v2982_v26 = vpop.f32.mrb[34].mxu1 }
 0x146   : > { %v1154_v33 = vmax.f32 %v2966_v37, %v2982_v26  ;;  %v1123_v11 = vpop.f32.mrb[35].mxu1 }
 0x147   : > { %v1152_v39 = vmax.f32 %v1058_v30, %v1123_v11  ;;  %v2985_v28 = vpop.f32.mrb[36].mxu1 }
 0x148   : > { %v1157_v44 = vmax.f32 %v2969_v23, %v2985_v28  ;;  %v1136_v48 = vpop.f32.mrb[37].mxu1 }
 0x149   : > { %v2986_v45 = vpop.f32.mrb[38].mxu1 }
 0x14a   : > { %v1139_v52 = vpop.f32.mrb[39].mxu1 }
 0x14b   : > { %v3013_v46 = vpop.f32.mrb[40].mxu1 }
 0x14c   : > { %3032 = vmatmul.mubr.msk.bf16.gmra.mrb[52].mxu0 %vm1340_vm1, %v1323_v31  ;;  %v1071_v31 = vpop.f32.mrb[37].mxu0  ;;  %v1266_v3 = vpop.f32.mrb[41].mxu1 }
 0x14d   : > { %3035 = vmatprep.mubr.msk.bf16.mxu0 %vm1340_vm1, %v1324_v51  ;;  %v2970_v51 = vpop.f32.mrb[38].mxu0  ;;  %v1155_v40 = vmax.f32 %v1071_v31, %v1136_v48  ;;  %v3014_v60 = vpop.f32.mrb[42].mxu1 }
 0x14e   : > { %v1074_v15 = vpop.f32.mrb[39].mxu0  ;;  %v1158_v47 = vmax.f32 %v2970_v51, %v2986_v45 }
 0x14f   : > { %v1156_v55 = vmax.f32 %v1074_v15, %v1139_v52  ;;  %v2997_v41 = vpop.f32.mrb[40].mxu0 }
 0x150   : > { %v1193_v62 = vpop.f32.mrb[41].mxu0 }
 0x151   : > { %v2998_v54 = vpop.f32.mrb[42].mxu0 }
 0x152   : > { %v1227_v5 = vmax.f32 %v1154_v33, %v2998_v54  ;;  %v1196_v0 = vpop.f32.mrb[43].mxu0 }
 0x153   : > { %v1225_v16 = vmax.f32 %v1152_v39, %v1196_v0  ;;  %v3001_v6 = vpop.f32.mrb[44].mxu0 }
 0x154   : > { %3036 = vmatmul.mubr.msk.bf16.gmra.mrb[56].mxu0 %vm1340_vm1, %v1325_v49  ;;  %v1226_v49 = vmax.f32 %v1153_v10, %v2997_v41  ;;  %v1230_v37 = vmax.f32 %v1157_v44, %v3001_v6 }
 0x155   : > { %3039 = vmatprep.mubr.msk.bf16.mxu0 %vm1340_vm1, %v1326_v7  ;;  %v1224_v7 = vmax.f32 %v1151_v38, %v1193_v62  ;;  %v1209_v38 = vpop.f32.mrb[45].mxu0 }
 0x156   : > { %v1299_v12 = vmax.f32 %v1226_v49, %v3013_v46  ;;  %v1228_v33 = vmax.f32 %v1155_v40, %v1209_v38  ;;  %v3002_v11 = vpop.f32.mrb[46].mxu0 }
 0x157   : > { %v1297_v20 = vmax.f32 %v1224_v7, %v1266_v3  ;;  %v1231_v17 = vmax.f32 %v1158_v47, %v3002_v11 }
 0x158   : > { %v1314_v25 = vadd.f32 %v2652_v59, %v1299_v12 }
 0x159   : > { %v1312_v24 = vadd.f32 %v2652_v59, %v1297_v20 }
 0x15c   : > { %3040 = vmatmul.mubr.msk.bf16.gmra.mrb[60].mxu0 %vm1340_vm1, %v1327_v4  ;;  %v1269_v4 = vpop.f32.mrb[43].mxu1 }
 0x15d   : > { %3043 = vmatprep.mubr.msk.bf16.mxu0 %vm1340_vm1, %v1328_v32  ;;  %v1300_v32 = vmax.f32 %v1227_v5, %v3014_v60  ;;  %v1298_v29 = vmax.f32 %v1225_v16, %v1269_v4  ;;  %v3017_v10 = vpop.f32.mrb[44].mxu1 }
 0x15e   : > { %v1282_v26 = vpop.f32.mrb[45].mxu1  ;;  %v1303_v22 = vmax.f32 %v1230_v37, %v3017_v10 }
 0x15f   : > { %v1315_v1 = vadd.f32 %v2652_v59, %v1300_v32  ;;  %v1313_v34 = vadd.f32 %v2652_v59, %v1298_v29  ;;  %v3018_v39 = vpop.f32.mrb[46].mxu1  ;;  %v1301_v57 = vmax.f32 %v1228_v33, %v1282_v26 }
 0x160   : > { %v1285_v23 = vpop.f32.mrb[47].mxu1  ;;  %v1304_v28 = vmax.f32 %v1231_v17, %v3018_v39 }
 0x161   : > { %v1931_v13 = vpack.c.bf16 %v1315_v1, %v1314_v25  ;;  %v1930_v30 = vpack.c.bf16 %v1313_v34, %v1312_v24  ;;  %v1316_v31 = vadd.f32 %v2652_v59, %v1301_v57 }
 0x162   : > { %v1319_v48 = vadd.f32 %v2652_v59, %v1304_v28 }
 0x163   : > { %3059 = vmatprep.subr.bf16.mxu0 %v1930_v30  ;;  %3135 = vmatprep.subr.bf16.mxu1 %v1930_v30 }
 0x164   : > { %3044 = vmatmul.mubr.msk.bf16.gmra.mrb[64].mxu0 %vm1340_vm1, %v1329_v27  ;;  %v1212_v27 = vpop.f32.mrb[47].mxu0  ;;  %3139 = vmatpush3.bf16.msra.mxu1 %v1930_v30 }
 0x165   : > { %3047 = vmatprep.mubr.msk.bf16.mxu0 %vm1340_vm1, %v1330_v9  ;;  %v1229_v50 = vmax.f32 %v1156_v55, %v1212_v27  ;;  %3060 = vmatpush3.bf16.msra.mxu0 %v1930_v30  ;;  %v1318_v9 = vadd.f32 %v2652_v59, %v1303_v22 }
 0x166   : > { %3061 = vmatprep.subr.bf16.mxu0 %v1931_v13  ;;  %3136 = vmatprep.subr.bf16.mxu1 %v1931_v13 }
 0x167   : > { %v1302_v44 = vmax.f32 %v1229_v50, %v1285_v23  ;;  %v1933_v40 = vpack.c.bf16 %v1319_v48, %v1318_v9 }
 0x168   : > { %3140 = vmatpush3.bf16.msra.mxu1 %v1931_v13 }
 0x169   : > { %v1317_v51 = vadd.f32 %v2652_v59, %v1302_v44  ;;  %3062 = vmatpush3.bf16.msra.mxu0 %v1931_v13 }
 0x16b   : > { %v1932_v45 = vpack.c.bf16 %v1317_v51, %v1316_v31 }
 0x16c   : > { %3048 = vmatmul.mubr.msk.bf16.gmra.mrb[68].mxu0 %vm1340_vm1, %v1331_v2 }
 0x16d   : > { %3051 = vmatprep.mubr.msk.bf16.mxu0 %vm1340_vm1, %v1332_v58  ;;  %3063 = vmatprep.subr.bf16.mxu0 %v1932_v45 }
 0x16e   : > { %3137 = vmatprep.subr.bf16.mxu1 %v1932_v45  ;;  %3064 = vmatpush3.bf16.msra.mxu0 %v1932_v45 }
 0x16f   : > { %3141 = vmatpush3.bf16.msra.mxu1 %v1932_v45  ;;  %3065 = vmatprep.subr.bf16.mxu0 %v1933_v40 }
 0x170   : > { %3138 = vmatprep.subr.bf16.mxu1 %v1933_v40 }
 0x172   : > { %3066 = vmatpush3.bf16.msra.mxu0 %v1933_v40 }
 0x173   : > { %3142 = vmatpush3.bf16.msra.mxu1 %v1933_v40 }
 0x174   : > { %3052 = vmatmul.mubr.msk.bf16.gmra.mrb[72].mxu0 %vm1340_vm1, %v1333_v19 }
 0x175   : > { %3055 = vmatprep.mubr.msk.bf16.mxu0 %vm1340_vm1, %v1334_v21 }
 0x17c   : > { %3056 = vmatmul.mubr.msk.bf16.gmra.mrb[76].mxu0 %vm1340_vm1, %v1335_v63 }
 0x217   : > { %v3868_v43 = vpop.f32.mrb[48].mxu0 }
 0x218   : > { %v3870_v56 = vpop.f32.mrb[49].mxu0  ;;  %v1568_v2 = vsel %vm448_vm0, %v3868_v43, -inf }
 0x219   : > { %1569 = vmax.xlane.f32.xlu1 %v1568_v2  ;;  %v3874_v35 = vpop.f32.mrb[50].mxu0  ;;  %v1562_v8 = vsel %vm448_vm0, %v3870_v56, -inf }
 0x21a   : > { %1563 = vmax.xlane.f32.xlu0 %v1562_v8  ;;  %v3878_v42 = vpop.f32.mrb[51].mxu0  ;;  %v1571_v53 = vsel %vm448_vm0, %v3874_v35, -inf }
 0x21b   : > { %v1565_v19 = vsel %vm448_vm0, %v3878_v42, -inf }
 0x21d   : > { %1572 = vmax.xlane.f32.xlu1 %v1571_v53 }
 0x21e   : > { %1566 = vmax.xlane.f32.xlu0 %v1565_v19 }
 0x21f   : > { %v3884_v58 = vpop.f32.mrb[52].mxu0 }
 0x220   : > { %v3886_v61 = vpop.f32.mrb[53].mxu0  ;;  %v1580_v21 = vsel %vm448_vm0, %v3884_v58, -inf }
 0x221   : > { %v3888_v36 = vpop.f32.mrb[54].mxu0  ;;  %v1574_v14 = vsel %vm448_vm0, %v3886_v61, -inf }
 0x222   : > { %1575 = vmax.xlane.f32.xlu0 %v1574_v14  ;;  %v3892_v18 = vpop.f32.mrb[55].mxu0  ;;  %v1583_v47 = vsel %vm448_vm0, %v3888_v36, -inf }
 0x223   : > { %v1577_v63 = vsel %vm448_vm0, %v3892_v18, -inf }
 0x224   : > { %1578 = vmax.xlane.f32.xlu1 %v1577_v63 }
 0x226   : > { %1581 = vmax.xlane.f32.xlu0 %v1580_v21 }
 0x227   : > { %v3898_v15 = vpop.f32.mrb[56].mxu0 }
 0x228   : > { %1584 = vmax.xlane.f32.xlu1 %v1583_v47  ;;  %v3902_v52 = vpop.f32.mrb[57].mxu0  ;;  %v1592_v62 = vsel %vm448_vm0, %v3898_v15, -inf }
 0x229   : > { %v3904_v55 = vpop.f32.mrb[58].mxu0  ;;  %v1586_v41 = vsel %vm448_vm0, %v3902_v52, -inf }
 0x22a   : > { %1587 = vmax.xlane.f32.xlu0 %v1586_v41  ;;  %v3908_v46 = vpop.f32.mrb[59].mxu0  ;;  %v1595_v7 = vsel %vm448_vm0, %v3904_v55, -inf }
 0x22b   : > { %v1589_v49 = vsel %vm448_vm0, %v3908_v46, -inf }
 0x22c   : > { %1590 = vmax.xlane.f32.xlu1 %v1589_v49 }
 0x22e   : > { %1593 = vmax.xlane.f32.xlu0 %v1592_v62 }
 0x22f   : > { %v3914_v3 = vpop.f32.mrb[60].mxu0 }
 0x230   : > { %1596 = vmax.xlane.f32.xlu1 %v1595_v7  ;;  %v3918_v54 = vpop.f32.mrb[61].mxu0  ;;  %v1604_v0 = vsel %vm448_vm0, %v3914_v3, -inf }
 0x231   : > { %v3920_v60 = vpop.f32.mrb[62].mxu0  ;;  %v1598_v5 = vsel %vm448_vm0, %v3918_v54, -inf }
 0x232   : > { %1599 = vmax.xlane.f32.xlu0 %v1598_v5  ;;  %v3924_v12 = vpop.f32.mrb[63].mxu0  ;;  %v1607_v16 = vsel %vm448_vm0, %v3920_v60, -inf }
 0x233   : > { %v1601_v59 = vsel %vm448_vm0, %v3924_v12, -inf }
 0x234   : > { %1602 = vmax.xlane.f32.xlu1 %v1601_v59 }
 0x236   : > { %1605 = vmax.xlane.f32.xlu0 %v1604_v0 }
 0x237   : > { %v3930_v4 = vpop.f32.mrb[64].mxu0 }
 0x238   : > { %1608 = vmax.xlane.f32.xlu1 %v1607_v16  ;;  %v3934_v20 = vpop.f32.mrb[65].mxu0  ;;  %v1616_v1 = vsel %vm448_vm0, %v3930_v4, -inf }
 0x239   : > { %v3936_v25 = vpop.f32.mrb[66].mxu0  ;;  %v1610_v32 = vsel %vm448_vm0, %v3934_v20, -inf }
 0x23a   : > { %1611 = vmax.xlane.f32.xlu0 %v1610_v32  ;;  %v3940_v24 = vpop.f32.mrb[67].mxu0  ;;  %v1619_v6 = vsel %vm448_vm0, %v3936_v25, -inf }
 0x23b   : > { %v1613_v29 = vsel %vm448_vm0, %v3940_v24, -inf }
 0x23c   : > { %1614 = vmax.xlane.f32.xlu1 %v1613_v29 }
 0x23e   : > { %1617 = vmax.xlane.f32.xlu0 %v1616_v1 }
 0x23f   : > { %v3946_v34 = vpop.f32.mrb[68].mxu0 }
 0x240   : > { %1620 = vmax.xlane.f32.xlu1 %v1619_v6  ;;  %v3950_v10 = vpop.f32.mrb[69].mxu0  ;;  %v1628_v30 = vsel %vm448_vm0, %v3946_v34, -inf }
 0x241   : > { %v3952_v13 = vpop.f32.mrb[70].mxu0  ;;  %v1622_v37 = vsel %vm448_vm0, %v3950_v10, -inf }
 0x242   : > { %1623 = vmax.xlane.f32.xlu0 %v1622_v37  ;;  %v3956_v38 = vpop.f32.mrb[71].mxu0  ;;  %v1631_v11 = vsel %vm448_vm0, %v3952_v13, -inf }
 0x243   : > { %v1625_v26 = vsel %vm448_vm0, %v3956_v38, -inf }
 0x244   : > { %1626 = vmax.xlane.f32.xlu1 %v1625_v26 }
 0x246   : > { %1629 = vmax.xlane.f32.xlu0 %v1628_v30 }
 0x247   : > { %v3962_v33 = vpop.f32.mrb[72].mxu0 }
 0x248   : > { %1632 = vmax.xlane.f32.xlu1 %v1631_v11  ;;  %v3966_v39 = vpop.f32.mrb[73].mxu0  ;;  %v1640_v50 = vsel %vm448_vm0, %v3962_v33, -inf }
 0x249   : > { %v3968_v17 = vpop.f32.mrb[74].mxu0  ;;  %v1634_v22 = vsel %vm448_vm0, %v3966_v39, -inf }
 0x24a   : > { %1635 = vmax.xlane.f32.xlu0 %v1634_v22  ;;  %v3972_v27 = vpop.f32.mrb[75].mxu0  ;;  %v1643_v9 = vsel %vm448_vm0, %v3968_v17, -inf }
 0x24b   : > { %v1637_v23 = vsel %vm448_vm0, %v3972_v27, -inf }
 0x24c   : > { %1638 = vmax.xlane.f32.xlu1 %v1637_v23 }
 0x24e   : > { %1641 = vmax.xlane.f32.xlu0 %v1640_v50 }
 0x24f   : > { %v3978_v57 = vpop.f32.mrb[76].mxu0 }
 0x250   : > { %1644 = vmax.xlane.f32.xlu1 %v1643_v9  ;;  %v3982_v28 = vpop.f32.mrb[77].mxu0  ;;  %v1652_v40 = vsel %vm448_vm0, %v3978_v57, -inf }
 0x251   : > { %v3984_v31 = vpop.f32.mrb[78].mxu0  ;;  %v1646_v44 = vsel %vm448_vm0, %v3982_v28, -inf }
 0x252   : > { %1647 = vmax.xlane.f32.xlu0 %v1646_v44  ;;  %v3988_v48 = vpop.f32.mrb[79].mxu0  ;;  %v1655_v45 = vsel %vm448_vm0, %v3984_v31, -inf }
 0x253   : > { %v1649_v51 = vsel %vm448_vm0, %v3988_v48, -inf }
 0x254   : > { %1650 = vmax.xlane.f32.xlu1 %v1649_v51 }
 0x256   : > { %1653 = vmax.xlane.f32.xlu0 %v1652_v40 }
 0x258   : > { %1656 = vmax.xlane.f32.xlu1 %v1655_v45 }
 0x2a6   : > { %v1570_v2 = vpop.xlane.xlu1 %1569 }
 0x2a7   : > { %v1660_v8 = vsub.f32 %v3868_v43, %v1570_v2  ;;  %v1564_v53 = vpop.xlane.xlu0 %1563 }
 0x2a8   : > { %v1658_v19 = vsub.f32 %v3870_v56, %v1564_v53 }
 0x2a9   : > { %v1694_v14 = vmul.f32 1.442695, %v1660_v8 }
 0x2aa   : > { %v1690_v63 = vmul.f32 1.442695, %v1658_v19  ;;  %v1573_v21 = vpop.xlane.xlu1 %1572 }
 0x2ab   : > { %v1661_v47 = vsub.f32 %v3874_v35, %v1573_v21  ;;  %v1567_v41 = vpop.xlane.xlu0 %1566 }
 0x2ac   : > { %3169 = vpow2.f32 %v1690_v63  ;;  %v1659_v49 = vsub.f32 %v3878_v42, %v1567_v41 }
 0x2ad   : > { %3171 = vpow2.f32 %v1694_v14  ;;  %v1696_v62 = vmul.f32 1.442695, %v1661_v47 }
 0x2ae   : > { %v1692_v7 = vmul.f32 1.442695, %v1659_v49 }
 0x2af   : > { %v1576_v5 = vpop.xlane.xlu0 %1575 }
 0x2b0   : > { %3173 = vpow2.f32 %v1692_v7  ;;  %v1662_v59 = vsub.f32 %v3886_v61, %v1576_v5 }
 0x2b1   : > { %v1579_v43 = vpop.xlane.xlu1 %1578  ;;  %3175 = vpow2.f32 %v1696_v62 }
 0x2b2   : > { %v1698_v0 = vmul.f32 1.442695, %v1662_v59  ;;  %v1663_v56 = vsub.f32 %v3892_v18, %v1579_v43 }
 0x2b3   : > { %v1582_v16 = vpop.xlane.xlu0 %1581 }
 0x2b4   : > { %3177 = vpow2.f32 %v1698_v0  ;;  %v1700_v32 = vmul.f32 1.442695, %v1663_v56  ;;  %v1664_v35 = vsub.f32 %v3884_v58, %v1582_v16 }
 0x2b5   : > { %v1585_v29 = vpop.xlane.xlu1 %1584 }
 0x2b6   : > { %v4003_v1 = vpop.eup %3169  ;;  %3179 = vpow2.f32 %v1700_v32  ;;  %v1702_v42 = vmul.f32 1.442695, %v1664_v35  ;;  %v1665_v6 = vsub.f32 %v3888_v36, %v1585_v29 }
 0x2b7   : > { %v1588_v37 = vpop.xlane.xlu0 %1587  ;;  %v1754_v61 = vsel %vm448_vm0, %v4003_v1, 0.0  ;;  %v4008_v26 = vpop.eup %3171 }
 0x2b8   : > { %3181 = vpow2.f32 %v1702_v42  ;;  %v1704_v18 = vmul.f32 1.442695, %v1665_v6  ;;  %v1666_v30 = vsub.f32 %v3902_v52, %v1588_v37  ;;  %1755 = vadd.xlane.f32.xlu0 %v1754_v61  ;;  %v1760_v36 = vsel %vm448_vm0, %v4008_v26, 0.0 }
 0x2b9   : > { %v1591_v11 = vpop.xlane.xlu1 %1590 }
 0x2ba   : > { %v4011_v58 = vpop.eup %3173  ;;  %3183 = vpow2.f32 %v1704_v18  ;;  %v1706_v22 = vmul.f32 1.442695, %v1666_v30  ;;  %v1667_v23 = vsub.f32 %v3908_v46, %v1591_v11 }
 0x2bb   : > { %v1594_v50 = vpop.xlane.xlu0 %1593  ;;  %v1757_v9 = vsel %vm448_vm0, %v4011_v58, 0.0  ;;  %v4018_v44 = vpop.eup %3175 }
 0x2bc   : > { %3185 = vpow2.f32 %v1706_v22  ;;  %v1708_v51 = vmul.f32 1.442695, %v1667_v23  ;;  %v1668_v52 = vsub.f32 %v3898_v15, %v1594_v50  ;;  %1761 = vadd.xlane.f32.xlu0 %v1760_v36  ;;  %1758 = vadd.xlane.f32.xlu1 %v1757_v9  ;;  %v1763_v19 = vsel %vm448_vm0, %v4018_v44, 0.0 }
 0x2bd   : > { %v1597_v40 = vpop.xlane.xlu1 %1596 }
 0x2be   : > { %v4021_v45 = vpop.eup %3177  ;;  %3187 = vpow2.f32 %v1708_v51  ;;  %v1710_v46 = vmul.f32 1.442695, %v1668_v52  ;;  %v1669_v2 = vsub.f32 %v3904_v55, %v1597_v40 }
 0x2bf   : > { %v1600_v8 = vpop.xlane.xlu0 %1599  ;;  %v1766_v53 = vsel %vm448_vm0, %v4021_v45, 0.0 }
 0x2c0   : > { %v4028_v14 = vpop.eup %3179  ;;  %3189 = vpow2.f32 %v1710_v46  ;;  %v1712_v15 = vmul.f32 1.442695, %v1669_v2  ;;  %v1670_v63 = vsub.f32 %v3918_v54, %v1600_v8  ;;  %1767 = vadd.xlane.f32.xlu0 %v1766_v53  ;;  %1764 = vadd.xlane.f32.xlu1 %v1763_v19 }
 0x2c1   : > { %v1603_v21 = vpop.xlane.xlu1 %1602  ;;  %v1769_v7 = vsel %vm448_vm0, %v4028_v14, 0.0 }
 0x2c2   : > { %v4031_v47 = vpop.eup %3181  ;;  %3191 = vpow2.f32 %v1712_v15  ;;  %v1714_v55 = vmul.f32 1.442695, %v1670_v63  ;;  %v1671_v41 = vsub.f32 %v3924_v12, %v1603_v21 }
 0x2c3   : > { %v1606_v49 = vpop.xlane.xlu0 %1605  ;;  %v1772_v62 = vsel %vm448_vm0, %v4031_v47, 0.0 }
 0x2c4   : > { %v4038_v5 = vpop.eup %3183  ;;  %3193 = vpow2.f32 %v1714_v55  ;;  %v1716_v54 = vmul.f32 1.442695, %v1671_v41  ;;  %v1672_v59 = vsub.f32 %v3914_v3, %v1606_v49  ;;  %1773 = vadd.xlane.f32.xlu0 %v1772_v62  ;;  %1770 = vadd.xlane.f32.xlu1 %v1769_v7 }
 0x2c5   : > { %v1609_v43 = vpop.xlane.xlu1 %1608  ;;  %v1775_v35 = vsel %vm448_vm0, %v4038_v5, 0.0 }
 0x2c6   : > { %v4041_v0 = vpop.eup %3185  ;;  %3195 = vpow2.f32 %v1716_v54  ;;  %v1718_v12 = vmul.f32 1.442695, %v1672_v59  ;;  %v1673_v56 = vsub.f32 %v3920_v60, %v1609_v43 }
 0x2c7   : > { %v1612_v16 = vpop.xlane.xlu0 %1611  ;;  %v1778_v32 = vsel %vm448_vm0, %v4041_v0, 0.0 }
 0x2c8   : > { %v4048_v29 = vpop.eup %3187  ;;  %3197 = vpow2.f32 %v1718_v12  ;;  %v1720_v3 = vmul.f32 1.442695, %v1673_v56  ;;  %v1674_v42 = vsub.f32 %v3934_v20, %v1612_v16  ;;  %1779 = vadd.xlane.f32.xlu0 %v1778_v32  ;;  %1776 = vadd.xlane.f32.xlu1 %v1775_v35 }
 0x2c9   : > { %v1615_v6 = vpop.xlane.xlu1 %1614  ;;  %v1781_v11 = vsel %vm448_vm0, %v4048_v29, 0.0 }
 0x2ca   : > { %v4051_v37 = vpop.eup %3189  ;;  %3199 = vpow2.f32 %v1720_v3  ;;  %v1722_v60 = vmul.f32 1.442695, %v1674_v42  ;;  %v1675_v61 = vsub.f32 %v3940_v24, %v1615_v6 }
 0x2cb   : > { %v1618_v18 = vpop.xlane.xlu0 %1617  ;;  %v1784_v30 = vsel %vm448_vm0, %v4051_v37, 0.0 }
 0x2cc   : > { %v4058_v22 = vpop.eup %3191  ;;  %3201 = vpow2.f32 %v1722_v60  ;;  %v1724_v20 = vmul.f32 1.442695, %v1675_v61  ;;  %v1676_v23 = vsub.f32 %v3930_v4, %v1618_v18  ;;  %1785 = vadd.xlane.f32.xlu0 %v1784_v30  ;;  %1782 = vadd.xlane.f32.xlu1 %v1781_v11 }
 0x2cd   : > { %v1621_v50 = vpop.xlane.xlu1 %1620  ;;  %v1787_v40 = vsel %vm448_vm0, %v4058_v22, 0.0 }
 0x2ce   : > { %v4061_v36 = vpop.eup %3193  ;;  %3203 = vpow2.f32 %v1724_v20  ;;  %v1726_v24 = vmul.f32 1.442695, %v1676_v23  ;;  %v1677_v9 = vsub.f32 %v3936_v25, %v1621_v50 }
 0x2cf   : > { %v1624_v51 = vpop.xlane.xlu0 %1623  ;;  %v1790_v52 = vsel %vm448_vm0, %v4061_v36, 0.0 }
 0x2d0   : > { %v4068_v46 = vpop.eup %3195  ;;  %3205 = vpow2.f32 %v1726_v24  ;;  %v1728_v4 = vmul.f32 1.442695, %v1677_v9  ;;  %v1678_v2 = vsub.f32 %v3950_v10, %v1624_v51  ;;  %1791 = vadd.xlane.f32.xlu0 %v1790_v52  ;;  %1788 = vadd.xlane.f32.xlu1 %v1787_v40 }
 0x2d1   : > { %v1627_v8 = vpop.xlane.xlu1 %1626  ;;  %v1793_v21 = vsel %vm448_vm0, %v4068_v46, 0.0 }
 0x2d2   : > { %v4071_v53 = vpop.eup %3197  ;;  %3207 = vpow2.f32 %v1728_v4  ;;  %v1730_v25 = vmul.f32 1.442695, %v1678_v2  ;;  %v1679_v19 = vsub.f32 %v3956_v38, %v1627_v8 }
 0x2d3   : > { %v1630_v15 = vpop.xlane.xlu0 %1629  ;;  %v1796_v63 = vsel %vm448_vm0, %v4071_v53, 0.0 }
 0x2d4   : > { %v4078_v55 = vpop.eup %3199  ;;  %3209 = vpow2.f32 %v1730_v25  ;;  %v1732_v10 = vmul.f32 1.442695, %v1679_v19  ;;  %v1680_v41 = vsub.f32 %v3946_v34, %v1630_v15  ;;  %1797 = vadd.xlane.f32.xlu0 %v1796_v63  ;;  %1794 = vadd.xlane.f32.xlu1 %v1793_v21 }
 0x2d5   : > { %v1633_v49 = vpop.xlane.xlu1 %1632  ;;  %v1799_v43 = vsel %vm448_vm0, %v4078_v55, 0.0 }
 0x2d6   : > { %v4081_v62 = vpop.eup %3201  ;;  %3211 = vpow2.f32 %v1732_v10  ;;  %v1734_v38 = vmul.f32 1.442695, %v1680_v41  ;;  %v1681_v7 = vsub.f32 %v3952_v13, %v1633_v49 }
 0x2d7   : > { %v1636_v54 = vpop.xlane.xlu0 %1635  ;;  %v1802_v59 = vsel %vm448_vm0, %v4081_v62, 0.0 }
 0x2d8   : > { %v4088_v12 = vpop.eup %3203  ;;  %3213 = vpow2.f32 %v1734_v38  ;;  %v1736_v34 = vmul.f32 1.442695, %v1681_v7  ;;  %v1682_v56 = vsub.f32 %v3966_v39, %v1636_v54  ;;  %1803 = vadd.xlane.f32.xlu0 %v1802_v59  ;;  %1800 = vadd.xlane.f32.xlu1 %v1799_v43 }
 0x2d9   : > { %v1639_v16 = vpop.xlane.xlu1 %1638  ;;  %v1805_v6 = vsel %vm448_vm0, %v4088_v12, 0.0 }
 0x2da   : > { %v4091_v32 = vpop.eup %3205  ;;  %3215 = vpow2.f32 %v1736_v34  ;;  %v1738_v13 = vmul.f32 1.442695, %v1682_v56  ;;  %v1683_v35 = vsub.f32 %v3972_v27, %v1639_v16 }
 0x2db   : > { %v1642_v3 = vpop.xlane.xlu0 %1641  ;;  %v1808_v42 = vsel %vm448_vm0, %v4091_v32, 0.0 }
 0x2dc   : > { %v4098_v60 = vpop.eup %3207  ;;  %3217 = vpow2.f32 %v1738_v13  ;;  %v1740_v39 = vmul.f32 1.442695, %v1683_v35  ;;  %v1684_v61 = vsub.f32 %v3962_v33, %v1642_v3  ;;  %1809 = vadd.xlane.f32.xlu0 %v1808_v42  ;;  %1806 = vadd.xlane.f32.xlu1 %v1805_v6  ;;  %v4159_v6 = vld [vmem:[%s4417_s7] sm:$0xff]  }
 0x2dd   : > { %v1645_v18 = vpop.xlane.xlu1 %1644  ;;  %v1811_v50 = vsel %vm448_vm0, %v4098_v60, 0.0  ;;  %3099 = vmatprep.subr.bf16.mxu1 %v4159_v6 }
 0x2de   : > { %v4101_v30 = vpop.eup %3209  ;;  %3219 = vpow2.f32 %v1740_v39  ;;  %v1742_v27 = vmul.f32 1.442695, %v1684_v61  ;;  %v1685_v11 = vsub.f32 %v3968_v17, %v1645_v18 }
 0x2df   : > { %v1648_v20 = vpop.xlane.xlu0 %1647  ;;  %v1814_v23 = vsel %vm448_vm0, %v4101_v30, 0.0 }
 0x2e0   : > { %v4108_v24 = vpop.eup %3211  ;;  %3221 = vpow2.f32 %v1742_v27  ;;  %v1744_v33 = vmul.f32 1.442695, %v1685_v11  ;;  %v1686_v9 = vsub.f32 %v3982_v28, %v1648_v20  ;;  %1815 = vadd.xlane.f32.xlu0 %v1814_v23  ;;  %1812 = vadd.xlane.f32.xlu1 %v1811_v50 }
 0x2e1   : > { %v1651_v51 = vpop.xlane.xlu1 %1650  ;;  %v1817_v8 = vsel %vm448_vm0, %v4108_v24, 0.0 }
 0x2e2   : > { %v4111_v52 = vpop.eup %3213  ;;  %3223 = vpow2.f32 %v1744_v33  ;;  %v1746_v17 = vmul.f32 1.442695, %v1686_v9  ;;  %v1687_v40 = vsub.f32 %v3988_v48, %v1651_v51 }
 0x2e3   : > { %v1654_v4 = vpop.xlane.xlu0 %1653  ;;  %v1820_v2 = vsel %vm448_vm0, %v4111_v52, 0.0 }
 0x2e4   : > { %v4118_v25 = vpop.eup %3215  ;;  %3225 = vpow2.f32 %v1746_v17  ;;  %v1748_v28 = vmul.f32 1.442695, %v1687_v40  ;;  %v1688_v19 = vsub.f32 %v3978_v57, %v1654_v4  ;;  %1821 = vadd.xlane.f32.xlu0 %v1820_v2  ;;  %1818 = vadd.xlane.f32.xlu1 %v1817_v8 }
 0x2e5   : > { %v1657_v15 = vpop.xlane.xlu1 %1656  ;;  %v1823_v41 = vsel %vm448_vm0, %v4118_v25, 0.0 }
 0x2e6   : > { %v4121_v63 = vpop.eup %3217  ;;  %3227 = vpow2.f32 %v1748_v28  ;;  %v1750_v48 = vmul.f32 1.442695, %v1688_v19  ;;  %v1689_v21 = vsub.f32 %v3984_v31, %v1657_v15 }
 0x2e7   : > { %v1826_v10 = vsel %vm448_vm0, %v4121_v63, 0.0 }
 0x2e8   : > { %v4128_v49 = vpop.eup %3219  ;;  %3229 = vpow2.f32 %v1750_v48  ;;  %v1752_v38 = vmul.f32 1.442695, %v1689_v21  ;;  %1827 = vadd.xlane.f32.xlu0 %v1826_v10  ;;  %1824 = vadd.xlane.f32.xlu1 %v1823_v41 }
 0x2e9   : > { %v1829_v31 = vsel %vm448_vm0, %v4128_v49, 0.0 }
 0x2ea   : > { %v4130_v57 = vpop.eup %3221  ;;  %3231 = vpow2.f32 %v1752_v38 }
 0x2eb   : > { %v1832_v7 = vsel %vm448_vm0, %v4130_v57, 0.0 }
 0x2ec   : > { %v4136_v54 = vpop.eup %3223  ;;  %1833 = vadd.xlane.f32.xlu0 %v1832_v7  ;;  %1830 = vadd.xlane.f32.xlu1 %v1829_v31 }
 0x2ed   : > { %v1835_v34 = vsel %vm448_vm0, %v4136_v54, 0.0 }
 0x2ee   : > { %v4138_v59 = vpop.eup %3225 }
 0x2ef   : > { %v1838_v43 = vsel %vm448_vm0, %v4138_v59, 0.0 }
 0x2f0   : > { %v4144_v56 = vpop.eup %3227  ;;  %1839 = vadd.xlane.f32.xlu0 %v1838_v43  ;;  %1836 = vadd.xlane.f32.xlu1 %v1835_v34 }
 0x2f1   : > { %v1841_v35 = vsel %vm448_vm0, %v4144_v56, 0.0 }
 0x2f2   : > { %v4146_v16 = vpop.eup %3229 }
 0x2f3   : > { %v1844_v13 = vsel %vm448_vm0, %v4146_v16, 0.0 }
 0x2f4   : > { %v4152_v3 = vpop.eup %3231  ;;  %1845 = vadd.xlane.f32.xlu0 %v1844_v13  ;;  %1842 = vadd.xlane.f32.xlu1 %v1841_v35 }
 0x2f5   : > { %v1847_v42 = vsel %vm448_vm0, %v4152_v3, 0.0 }
 0x2f8   : > { %1848 = vadd.xlane.f32.xlu1 %v1847_v42 }
 0x345   : > { %v1756_v39 = vpop.xlane.xlu0 %1755 }
 0x346   : > { %3233 = vrcp.f32 %v1756_v39 }
 0x349   : > { %v1762_v61 = vpop.xlane.xlu0 %1761  ;;  %v1759_v18 = vpop.xlane.xlu1 %1758 }
 0x34a   : > { %3235 = vrcp.f32 %v1759_v18 }
 0x34b   : > { %3237 = vrcp.f32 %v1762_v61 }
 0x34d   : > { %v1768_v27 = vpop.xlane.xlu0 %1767  ;;  %v1765_v11 = vpop.xlane.xlu1 %1764 }
 0x34e   : > { %3239 = vrcp.f32 %v1765_v11 }
 0x34f   : > { %3241 = vrcp.f32 %v1768_v27 }
 0x350   : > { %v3234_v50 = vpop.eup %3233 }
 0x351   : > { %v1774_v20 = vpop.xlane.xlu0 %1773  ;;  %v1771_v23 = vpop.xlane.xlu1 %1770  ;;  %v1851_v17 = vmul.f32 %v3234_v50, %v4003_v1 }
 0x352   : > { %3243 = vrcp.f32 %v1771_v23 }
 0x353   : > { %3245 = vrcp.f32 %v1774_v20 }
 0x354   : > { %v3236_v33 = vpop.eup %3235 }
 0x355   : > { %v1780_v9 = vpop.xlane.xlu0 %1779  ;;  %v1777_v51 = vpop.xlane.xlu1 %1776  ;;  %v1853_v40 = vmul.f32 %v3236_v33, %v4011_v58 }
 0x356   : > { %v3238_v4 = vpop.eup %3237  ;;  %3247 = vrcp.f32 %v1777_v51 }
 0x357   : > { %v1914_v2 = vpack.c.bf16 %v1853_v40, %v1851_v17  ;;  %3249 = vrcp.f32 %v1780_v9  ;;  %v1855_v15 = vmul.f32 %v3238_v4, %v4008_v26 }
 0x358   : > { %v3240_v8 = vpop.eup %3239 }
 0x359   : > { %v1786_v28 = vpop.xlane.xlu0 %1785  ;;  %v1783_v19 = vpop.xlane.xlu1 %1782  ;;  %v1857_v48 = vmul.f32 %v3240_v8, %v4018_v44  ;;  %3067 = vmatprep.mubr.msk.bf16.mxu0 %vm448_vm0, %v1914_v2 }
 0x35a   : > { %v3242_v21 = vpop.eup %3241  ;;  %3251 = vrcp.f32 %v1783_v19 }
 0x35b   : > { %v1915_v10 = vpack.c.bf16 %v1857_v48, %v1855_v15  ;;  %3253 = vrcp.f32 %v1786_v28  ;;  %v1859_v38 = vmul.f32 %v3242_v21, %v4021_v45 }
 0x35c   : > { %v3244_v41 = vpop.eup %3243 }
 0x35d   : > { %v1792_v1 = vpop.xlane.xlu0 %1791  ;;  %v1789_v58 = vpop.xlane.xlu1 %1788  ;;  %3068 = vmatmul.mubr.msk.bf16.vlgmr.msra.gmra.mrb[80].mxu0 %vm448_vm0, %v1915_v10  ;;  %v1861_v7 = vmul.f32 %v3244_v41, %v4028_v14 }
 0x35e   : > { %v3246_v31 = vpop.eup %3245  ;;  %3255 = vrcp.f32 %v1789_v58 }
 0x35f   : > { %v1916_v26 = vpack.c.bf16 %v1861_v7, %v1859_v38  ;;  %3257 = vrcp.f32 %v1792_v1  ;;  %v1863_v13 = vmul.f32 %v3246_v31, %v4031_v47 }
 0x360   : > { %v3248_v43 = vpop.eup %3247 }
 0x361   : > { %v1798_v44 = vpop.xlane.xlu0 %1797  ;;  %v1795_v34 = vpop.xlane.xlu1 %1794  ;;  %3071 = vmatprep.mubr.msk.bf16.mxu0 %vm448_vm0, %v1916_v26  ;;  %v1865_v35 = vmul.f32 %v3248_v43, %v4038_v5 }
 0x362   : > { %v3250_v42 = vpop.eup %3249  ;;  %3259 = vrcp.f32 %v1795_v34 }
 0x363   : > { %v1917_v39 = vpack.c.bf16 %v1865_v35, %v1863_v13  ;;  %3261 = vrcp.f32 %v1798_v44  ;;  %v1867_v18 = vmul.f32 %v3250_v42, %v4041_v0 }
 0x364   : > { %v3252_v61 = vpop.eup %3251 }
 0x365   : > { %v1804_v45 = vpop.xlane.xlu0 %1803  ;;  %v1801_v14 = vpop.xlane.xlu1 %1800  ;;  %3072 = vmatmul.mubr.msk.bf16.gmra.mrb[84].mxu0 %vm448_vm0, %v1917_v39  ;;  %v1869_v27 = vmul.f32 %v3252_v61, %v4048_v29 }
 0x366   : > { %v3254_v11 = vpop.eup %3253  ;;  %3263 = vrcp.f32 %v1801_v14 }
 0x367   : > { %v1918_v20 = vpack.c.bf16 %v1869_v27, %v1867_v18  ;;  %3265 = vrcp.f32 %v1804_v45  ;;  %v1871_v50 = vmul.f32 %v3254_v11, %v4051_v37 }
 0x368   : > { %v3256_v23 = vpop.eup %3255 }
 0x369   : > { %v1810_v47 = vpop.xlane.xlu0 %1809  ;;  %v1807_v5 = vpop.xlane.xlu1 %1806  ;;  %3075 = vmatprep.mubr.msk.bf16.mxu0 %vm448_vm0, %v1918_v20  ;;  %v1873_v33 = vmul.f32 %v3256_v23, %v4058_v22 }
 0x36a   : > { %v3258_v9 = vpop.eup %3257  ;;  %3267 = vrcp.f32 %v1807_v5 }
 0x36b   : > { %v1919_v51 = vpack.c.bf16 %v1873_v33, %v1871_v50  ;;  %3269 = vrcp.f32 %v1810_v47  ;;  %v1875_v40 = vmul.f32 %v3258_v9, %v4061_v36  ;;  %v3168_v36 = vld [vmem:[%s4417_s7 + $0x8] sm:$0xff]  }
 0x36c   : > { %v3260_v17 = vpop.eup %3259 }
 0x36d   : > { %v1816_v0 = vpop.xlane.xlu0 %1815  ;;  %v1813_v29 = vpop.xlane.xlu1 %1812  ;;  %3076 = vmatmul.mubr.msk.bf16.gmra.mrb[88].mxu0 %vm448_vm0, %v1919_v51  ;;  %v1877_v4 = vmul.f32 %v3260_v17, %v4068_v46 }
 0x36e   : > { %v3262_v2 = vpop.eup %3261  ;;  %3271 = vrcp.f32 %v1813_v29 }
 0x36f   : > { %v1920_v8 = vpack.c.bf16 %v1877_v4, %v1875_v40  ;;  %3273 = vrcp.f32 %v1816_v0  ;;  %v1879_v19 = vmul.f32 %v3262_v2, %v4071_v53 }
 0x370   : > { %v3264_v28 = vpop.eup %3263 }
 0x371   : > { %v1822_v37 = vpop.xlane.xlu0 %1821  ;;  %v1819_v22 = vpop.xlane.xlu1 %1818  ;;  %v1881_v15 = vmul.f32 %v3264_v28, %v4078_v55  ;;  %3079 = vmatprep.mubr.msk.bf16.mxu1 %vm448_vm0, %v1920_v8 }
 0x372   : > { %v3266_v48 = vpop.eup %3265  ;;  %3275 = vrcp.f32 %v1819_v22 }
 0x373   : > { %v1921_v21 = vpack.c.bf16 %v1881_v15, %v1879_v19  ;;  %3277 = vrcp.f32 %v1822_v37  ;;  %v1883_v1 = vmul.f32 %v3266_v48, %v4081_v62 }
 0x374   : > { %v3268_v46 = vpop.eup %3267 }
 0x375   : > { %v1828_v10 = vpop.xlane.xlu0 %1827  ;;  %v1825_v41 = vpop.xlane.xlu1 %1824  ;;  %3080 = vmatmul.mubr.msk.bf16.vlgmr.msra.gmra.mrb[48].mxu1 %vm448_vm0, %v1921_v21  ;;  %v1885_v53 = vmul.f32 %v3268_v46, %v4088_v12 }
 0x376   : > { %v3270_v55 = vpop.eup %3269  ;;  %3279 = vrcp.f32 %v1825_v41  ;;  %3100 = vmatpush3.bf16.msra.mxu1 %v4159_v6 }
 0x377   : > { %v1922_v58 = vpack.c.bf16 %v1885_v53, %v1883_v1  ;;  %3101 = vmatprep.subr.bf16.mxu1 %v3168_v36  ;;  %3281 = vrcp.f32 %v1828_v10  ;;  %v1887_v26 = vmul.f32 %v3270_v55, %v4091_v32 }
 0x378   : > { %v3272_v38 = vpop.eup %3271 }
 0x379   : > { %v1834_v7 = vpop.xlane.xlu0 %1833  ;;  %v1831_v31 = vpop.xlane.xlu1 %1830  ;;  %3083 = vmatprep.mubr.msk.bf16.mxu1 %vm448_vm0, %v1922_v58  ;;  %v1889_v43 = vmul.f32 %v3272_v38, %v4098_v60 }
 0x37a   : > { %v3274_v44 = vpop.eup %3273  ;;  %3283 = vrcp.f32 %v1831_v31  ;;  %3102 = vmatpush3.bf16.msra.mxu1 %v3168_v36 }
 0x37b   : > { %v1923_v62 = vpack.c.bf16 %v1889_v43, %v1887_v26  ;;  %3285 = vrcp.f32 %v1834_v7  ;;  %v1891_v13 = vmul.f32 %v3274_v44, %v4101_v30 }
 0x37c   : > { %v3276_v12 = vpop.eup %3275 }
 0x37d   : > { %v1840_v34 = vpop.xlane.xlu0 %1839  ;;  %v1837_v6 = vpop.xlane.xlu1 %1836  ;;  %3084 = vmatmul.mubr.msk.bf16.gmra.mrb[52].mxu1 %vm448_vm0, %v1923_v62  ;;  %v1893_v35 = vmul.f32 %v3276_v12, %v4108_v24 }
 0x37e   : > { %v3278_v42 = vpop.eup %3277  ;;  %3287 = vrcp.f32 %v1837_v6 }
 0x37f   : > { %v1924_v39 = vpack.c.bf16 %v1893_v35, %v1891_v13  ;;  %3289 = vrcp.f32 %v1840_v34  ;;  %v1895_v45 = vmul.f32 %v3278_v42, %v4111_v52 }
 0x380   : > { %v3280_v32 = vpop.eup %3279 }
 0x381   : > { %v1846_v60 = vpop.xlane.xlu0 %1845  ;;  %v1843_v61 = vpop.xlane.xlu1 %1842  ;;  %3087 = vmatprep.mubr.msk.bf16.mxu1 %vm448_vm0, %v1924_v39  ;;  %v1897_v14 = vmul.f32 %v3280_v32, %v4118_v25 }
 0x382   : > { %v3282_v18 = vpop.eup %3281  ;;  %3291 = vrcp.f32 %v1843_v61 }
 0x383   : > { %3293 = vrcp.f32 %v1846_v60  ;;  %v1925_v27 = vpack.c.bf16 %v1897_v14, %v1895_v45  ;;  %v1899_v24 = vmul.f32 %v3282_v18, %v4121_v63 }
 0x384   : > { %v3284_v30 = vpop.eup %3283 }
 0x385   : > { %v1849_v11 = vpop.xlane.xlu1 %1848  ;;  %3088 = vmatmul.mubr.msk.bf16.gmra.mrb[56].mxu1 %vm448_vm0, %v1925_v27  ;;  %v1901_v20 = vmul.f32 %v3284_v30, %v4128_v49  ;;  %v3286_v23 = vpop.eup %3285 }
 0x386   : > { %3295 = vrcp.f32 %v1849_v11  ;;  %v1903_v52 = vmul.f32 %v3286_v23, %v4130_v57  ;;  %v4233_v23 = vld [vmem:[%s4418_s8] ss:$0 sm:$0xff] }
 0x387   : > { %v1926_v47 = vpack.c.bf16 %v1901_v20, %v1899_v24 }
 0x388   : > { %v3288_v5 = vpop.eup %3287 }
 0x389   : > { %3091 = vmatprep.mubr.msk.bf16.mxu1 %vm448_vm0, %v1926_v47  ;;  %v1905_v25 = vmul.f32 %v3288_v5, %v4136_v54  ;;  %v3290_v50 = vpop.eup %3289  ;;  %v4238_v5 = vld [vmem:[%s4419_s9] ss:$0 sm:$0xff] }
 0x38a   : > { %v1907_v17 = vmul.f32 %v3290_v50, %v4138_v59 }
 0x38b   : > { %v1927_v33 = vpack.c.bf16 %v1905_v25, %v1903_v52 }
 0x38c   : > { %v3292_v9 = vpop.eup %3291 }
 0x38d   : > { %v3294_v51 = vpop.eup %3293  ;;  %3092 = vmatmul.mubr.msk.bf16.gmra.mrb[60].mxu1 %vm448_vm0, %v1927_v33  ;;  %v1909_v63 = vmul.f32 %v3292_v9, %v4144_v56 }
 0x38e   : > { %v1911_v29 = vmul.f32 %v3294_v51, %v4146_v16 }
 0x38f   : > { %v1928_v0 = vpack.c.bf16 %v1909_v63, %v1907_v17 }
 0x390   : > { %v3296_v49 = vpop.eup %3295 }
 0x391   : > { %v1913_v40 = vmul.f32 %v3296_v49, %v4152_v3  ;;  %3095 = vmatprep.mubr.msk.bf16.mxu1 %vm448_vm0, %v1928_v0  ;;  %v3297_v0 = vld [vmem:[%s3429_s26 + $0x10] sm:$0xff] }
 0x393   : > { %v1929_v57 = vpack.c.bf16 %v1913_v40, %v1911_v29 }
 0x395   : > { %3096 = vmatmul.mubr.msk.bf16.gmra.mrb[64].mxu1 %vm448_vm0, %v1929_v57  ;;  %v3298_v57 = vld [vmem:[%s3429_s26] sm:$0xff] }
 0x430   : > { %v3069_v54 = vpop.f32.mrb[80].mxu0 }
 0x431   : > { %v2016_v4 = vpop.f32.mrb[81].mxu0 }
 0x432   : > { %v3070_v2 = vpop.f32.mrb[82].mxu0 }
 0x433   : > { %v2144_v8 = vpack.c.bf16 %v3070_v2, %v3069_v54  ;;  %v2019_v28 = vpop.f32.mrb[83].mxu0  ;;  %v3299_v2 = vld [vmem:[%s3429_s26 + $0x18] sm:$0xff] }
 0x434   : > { %v2143_v37 = vpack.c.bf16 %v2019_v28, %v2016_v4  ;;  %v3300_v28 = vld [vmem:[%s3429_s26 + $0x8] sm:$0xff] }
 0x436   : > { %3103 = vmatprep.mubr.msk.bf16.mxu1 %vm1340_vm1, %v2143_v37 }
 0x437   : > { %3104 = vmatmul.mubr.msk.bf16.vlgmr.msra.gmra.mrb[68].mxu1 %vm1340_vm1, %v2144_v8 }
 0x438   : > { %v3073_v59 = vpop.f32.mrb[84].mxu0 }
 0x439   : > { %v2032_v56 = vpop.f32.mrb[85].mxu0 }
 0x43a   : > { %v3074_v16 = vpop.f32.mrb[86].mxu0 }
 0x43b   : > { %v2146_v22 = vpack.c.bf16 %v3074_v16, %v3073_v59  ;;  %v2035_v3 = vpop.f32.mrb[87].mxu0 }
 0x43c   : > { %v2145_v19 = vpack.c.bf16 %v2035_v3, %v2032_v56 }
 0x43e   : > { %3107 = vmatprep.mubr.msk.bf16.mxu1 %vm1340_vm1, %v2145_v19 }
 0x43f   : > { %3108 = vmatmul.mubr.msk.bf16.gmra.mrb[72].mxu1 %vm1340_vm1, %v2146_v22 }
 0x440   : > { %v3077_v15 = vpop.f32.mrb[88].mxu0 }
 0x441   : > { %v2048_v48 = vpop.f32.mrb[89].mxu0 }
 0x442   : > { %v3078_v21 = vpop.f32.mrb[90].mxu0 }
 0x443   : > { %v2148_v36 = vpack.c.bf16 %v3078_v21, %v3077_v15  ;;  %v2051_v46 = vpop.f32.mrb[91].mxu0 }
 0x444   : > { %v2147_v10 = vpack.c.bf16 %v2051_v46, %v2048_v48  ;;  %v3301_v46 = vld [vmem:[%s3429_s26 + $0x30] sm:$0xff] }
 0x446   : > { %3111 = vmatprep.mubr.msk.bf16.mxu1 %vm1340_vm1, %v2147_v10 }
 0x447   : > { %3112 = vmatmul.mubr.msk.bf16.gmra.mrb[76].mxu1 %vm1340_vm1, %v2148_v36 }
 0x448   : > { %v3081_v41 = vpop.f32.mrb[48].mxu1 }
 0x449   : > { %v2064_v1 = vpop.f32.mrb[49].mxu1 }
 0x44a   : > { %v3082_v53 = vpop.f32.mrb[50].mxu1 }
 0x44b   : > { %v2150_v55 = vpack.c.bf16 %v3082_v53, %v3081_v41  ;;  %v2067_v58 = vpop.f32.mrb[51].mxu1 }
 0x44c   : > { %v2149_v38 = vpack.c.bf16 %v2067_v58, %v2064_v1  ;;  %v3302_v1 = vld [vmem:[%s3429_s26 + $0x20] sm:$0xff]  ;;  %v3303_v58 = vld [vmem:[%s3429_s26 + $0x38] sm:$0xff] }
 0x44e   : > { %3115 = vmatprep.mubr.msk.bf16.mxu1 %vm1340_vm1, %v2149_v38 }
 0x44f   : > { %3116 = vmatmul.mubr.msk.bf16.gmra.mrb[80].mxu1 %vm1340_vm1, %v2150_v55 }
 0x450   : > { %v3085_v7 = vpop.f32.mrb[52].mxu1 }
 0x451   : > { %v2080_v31 = vpop.f32.mrb[53].mxu1 }
 0x452   : > { %v3086_v26 = vpop.f32.mrb[54].mxu1 }
 0x453   : > { %v2152_v43 = vpack.c.bf16 %v3086_v26, %v3085_v7  ;;  %v2083_v44 = vpop.f32.mrb[55].mxu1  ;;  %v3304_v7 = vld [vmem:[%s3429_s26 + $0x28] sm:$0xff] }
 0x454   : > { %v2151_v62 = vpack.c.bf16 %v2083_v44, %v2080_v31 }
 0x456   : > { %3119 = vmatprep.mubr.msk.bf16.mxu1 %vm1340_vm1, %v2151_v62 }
 0x457   : > { %3120 = vmatmul.mubr.msk.bf16.gmra.mrb[84].mxu1 %vm1340_vm1, %v2152_v43 }
 0x458   : > { %v3089_v12 = vpop.f32.mrb[56].mxu1 }
 0x459   : > { %v2096_v34 = vpop.f32.mrb[57].mxu1 }
 0x45a   : > { %v3090_v6 = vpop.f32.mrb[58].mxu1 }
 0x45b   : > { %v2154_v13 = vpack.c.bf16 %v3090_v6, %v3089_v12  ;;  %v2099_v35 = vpop.f32.mrb[59].mxu1 }
 0x45c   : > { %v2153_v42 = vpack.c.bf16 %v2099_v35, %v2096_v34 }
 0x45e   : > { %3123 = vmatprep.mubr.msk.bf16.mxu1 %vm1340_vm1, %v2153_v42 }
 0x45f   : > { %3124 = vmatmul.mubr.msk.bf16.gmra.mrb[88].mxu1 %vm1340_vm1, %v2154_v13 }
 0x460   : > { %v3093_v39 = vpop.f32.mrb[60].mxu1 }
 0x461   : > { %v2112_v32 = vpop.f32.mrb[61].mxu1 }
 0x462   : > { %v3094_v60 = vpop.f32.mrb[62].mxu1 }
 0x463   : > { %v2156_v61 = vpack.c.bf16 %v3094_v60, %v3093_v39  ;;  %v2115_v45 = vpop.f32.mrb[63].mxu1  ;;  %v3305_v39 = vld [vmem:[%s3429_s26 + $0x50] sm:$0xff] }
 0x464   : > { %v2155_v14 = vpack.c.bf16 %v2115_v45, %v2112_v32 }
 0x466   : > { %3127 = vmatprep.mubr.msk.bf16.mxu1 %vm1340_vm1, %v2155_v14 }
 0x467   : > { %3128 = vmatmul.mubr.msk.bf16.gmra.mrb[92].mxu1 %vm1340_vm1, %v2156_v61  ;;  %v3306_v61 = vld [vmem:[%s3429_s26 + $0x40] sm:$0xff] }
 0x468   : > { %v3097_v18 = vpop.f32.mrb[64].mxu1 }
 0x469   : > { %v2128_v27 = vpop.f32.mrb[65].mxu1 }
 0x46a   : > { %v3098_v30 = vpop.f32.mrb[66].mxu1 }
 0x46b   : > { %v2158_v11 = vpack.c.bf16 %v3098_v30, %v3097_v18  ;;  %v2131_v24 = vpop.f32.mrb[67].mxu1  ;;  %v3307_v18 = vld [vmem:[%s3429_s26 + $0x58] sm:$0xff]  ;;  %v3308_v30 = vld [vmem:[%s3429_s26 + $0x48] sm:$0xff] }
 0x46c   : > { %v2157_v20 = vpack.c.bf16 %v2131_v24, %v2128_v27 }
 0x46e   : > { %3131 = vmatprep.mubr.msk.bf16.mxu1 %vm1340_vm1, %v2157_v20 }
 0x46f   : > { %3132 = vmatmul.mubr.msk.bf16.gmra.mrb[96].mxu1 %vm1340_vm1, %v2158_v11 }
 0x50a   : > { %v3105_v47 = vpop.f32.mrb[68].mxu1 }
 0x50b   : > { %v2393_v52 = vmul.f32 %v3105_v47, %v4233_v23  ;;  %v2257_v25 = vpop.f32.mrb[69].mxu1 }
 0x50c   : > { %v2391_v50 = vmul.f32 %v4233_v23, %v2257_v25  ;;  %v3106_v33 = vpop.f32.mrb[70].mxu1 }
 0x50d   : > { %v2432_v9 = vadd.f32 %v4238_v5, %v2393_v52  ;;  %v2394_v51 = vmul.f32 %v3106_v33, %v4233_v23  ;;  %v2260_v17 = vpop.f32.mrb[71].mxu1 }
 0x50e   : > { %v2430_v63 = vadd.f32 %v4238_v5, %v2391_v50  ;;  %v2392_v49 = vmul.f32 %v4233_v23, %v2260_v17 }
 0x50f   : > { %v2464_v29 = vadd.f32 %v3297_v0, %v2432_v9  ;;  %v2433_v40 = vadd.f32 %v4238_v5, %v2394_v51 }
 0x510   : > { %v2462_v54 = vadd.f32 %v3298_v57, %v2430_v63  ;;  %v2431_v4 = vadd.f32 %v4238_v5, %v2392_v49  ;;  %v3309_v63 = vld [vmem:[%s3429_s26 + $0x70] sm:$0xff] }
 0x511   : > { %2496 = vst.msk [vmem:[%s4249_s27 + $0x10] sm:$0xff] %vm448_vm0, %v2464_v29  ;;  %v2465_v8 = vadd.f32 %v3299_v2, %v2433_v40  ;;  %v3310_v29 = vld [vmem:[%s3429_s26 + $0x60] sm:$0xff]  ;;  %v3312_v2 = vld [vmem:[%s3429_s26 + $0x68] sm:$0xff] }
 0x512   : > { %2494 = vst.msk [vmem:[%s4249_s27] sm:$0xff] %vm448_vm0, %v2462_v54  ;;  %v2463_v37 = vadd.f32 %v3300_v28, %v2431_v4  ;;  %v3109_v59 = vpop.f32.mrb[72].mxu1  ;;  %v3311_v54 = vld [vmem:[%s3429_s26 + $0x78] sm:$0xff] }
 0x513   : > { %2497 = vst.msk [vmem:[%s4249_s27 + $0x18] sm:$0xff] %vm448_vm0, %v2465_v8  ;;  %v2397_v56 = vmul.f32 %v3109_v59, %v4233_v23  ;;  %v2273_v16 = vpop.f32.mrb[73].mxu1 }
 0x514   : > { %2495 = vst.msk [vmem:[%s4249_s27 + $0x8] sm:$0xff] %vm448_vm0, %v2463_v37  ;;  %v2395_v22 = vmul.f32 %v4233_v23, %v2273_v16  ;;  %v3110_v3 = vpop.f32.mrb[74].mxu1 }
 0x515   : > { %v2436_v19 = vadd.f32 %v4238_v5, %v2397_v56  ;;  %v2398_v15 = vmul.f32 %v3110_v3, %v4233_v23  ;;  %v2276_v48 = vpop.f32.mrb[75].mxu1 }
 0x516   : > { %v2434_v21 = vadd.f32 %v4238_v5, %v2395_v22  ;;  %v2396_v36 = vmul.f32 %v4233_v23, %v2276_v48 }
 0x517   : > { %v2468_v10 = vadd.f32 %v3301_v46, %v2436_v19  ;;  %v2437_v41 = vadd.f32 %v4238_v5, %v2398_v15 }
 0x518   : > { %v2466_v53 = vadd.f32 %v3302_v1, %v2434_v21  ;;  %v2435_v55 = vadd.f32 %v4238_v5, %v2396_v36  ;;  %v3313_v21 = vld [vmem:[%s3429_s26 + $0x90] sm:$0xff] }
 0x519   : > { %2500 = vst.msk [vmem:[%s4249_s27 + $0x30] sm:$0xff] %vm448_vm0, %v2468_v10  ;;  %v2469_v38 = vadd.f32 %v3303_v58, %v2437_v41  ;;  %v3314_v10 = vld [vmem:[%s3429_s26 + $0x80] sm:$0xff]  ;;  %v3316_v58 = vld [vmem:[%s3429_s26 + $0x88] sm:$0xff] }
 0x51a   : > { %2498 = vst.msk [vmem:[%s4249_s27 + $0x20] sm:$0xff] %vm448_vm0, %v2466_v53  ;;  %v2467_v31 = vadd.f32 %v3304_v7, %v2435_v55  ;;  %v3113_v26 = vpop.f32.mrb[76].mxu1  ;;  %v3315_v53 = vld [vmem:[%s3429_s26 + $0x98] sm:$0xff] }
 0x51b   : > { %2501 = vst.msk [vmem:[%s4249_s27 + $0x38] sm:$0xff] %vm448_vm0, %v2469_v38  ;;  %v2401_v43 = vmul.f32 %v3113_v26, %v4233_v23  ;;  %v2289_v44 = vpop.f32.mrb[77].mxu1 }
 0x51c   : > { %2499 = vst.msk [vmem:[%s4249_s27 + $0x28] sm:$0xff] %vm448_vm0, %v2467_v31  ;;  %v2399_v62 = vmul.f32 %v4233_v23, %v2289_v44  ;;  %v3114_v12 = vpop.f32.mrb[78].mxu1 }
 0x51d   : > { %v2440_v34 = vadd.f32 %v4238_v5, %v2401_v43  ;;  %v2402_v6 = vmul.f32 %v3114_v12, %v4233_v23  ;;  %v2292_v13 = vpop.f32.mrb[79].mxu1 }
 0x51e   : > { %v2438_v35 = vadd.f32 %v4238_v5, %v2399_v62  ;;  %v2400_v42 = vmul.f32 %v4233_v23, %v2292_v13 }
 0x51f   : > { %v2472_v32 = vadd.f32 %v3305_v39, %v2440_v34  ;;  %v2441_v60 = vadd.f32 %v4238_v5, %v2402_v6 }
 0x520   : > { %v2470_v45 = vadd.f32 %v3306_v61, %v2438_v35  ;;  %v2439_v14 = vadd.f32 %v4238_v5, %v2400_v42  ;;  %v3317_v35 = vld [vmem:[%s3429_s26 + $0xb0] sm:$0xff] }
 0x521   : > { %2504 = vst.msk [vmem:[%s4249_s27 + $0x50] sm:$0xff] %vm448_vm0, %v2472_v32  ;;  %v2473_v27 = vadd.f32 %v3307_v18, %v2441_v60  ;;  %v3318_v32 = vld [vmem:[%s3429_s26 + $0xa0] sm:$0xff]  ;;  %v3320_v18 = vld [vmem:[%s3429_s26 + $0xa8] sm:$0xff] }
 0x522   : > { %2502 = vst.msk [vmem:[%s4249_s27 + $0x40] sm:$0xff] %vm448_vm0, %v2470_v45  ;;  %v2471_v11 = vadd.f32 %v3308_v30, %v2439_v14  ;;  %v3117_v24 = vpop.f32.mrb[80].mxu1  ;;  %v3319_v45 = vld [vmem:[%s3429_s26 + $0xb8] sm:$0xff] }
 0x523   : > { %2505 = vst.msk [vmem:[%s4249_s27 + $0x58] sm:$0xff] %vm448_vm0, %v2473_v27  ;;  %v2405_v20 = vmul.f32 %v3117_v24, %v4233_v23  ;;  %v2305_v47 = vpop.f32.mrb[81].mxu1 }
 0x524   : > { %2503 = vst.msk [vmem:[%s4249_s27 + $0x48] sm:$0xff] %vm448_vm0, %v2471_v11  ;;  %v2403_v52 = vmul.f32 %v4233_v23, %v2305_v47  ;;  %v3118_v25 = vpop.f32.mrb[82].mxu1 }
 0x525   : > { %v2444_v50 = vadd.f32 %v4238_v5, %v2405_v20  ;;  %v2406_v33 = vmul.f32 %v3118_v25, %v4233_v23  ;;  %v2308_v9 = vpop.f32.mrb[83].mxu1 }
 0x526   : > { %v2442_v51 = vadd.f32 %v4238_v5, %v2403_v52  ;;  %v2404_v17 = vmul.f32 %v4233_v23, %v2308_v9 }
 0x527   : > { %v2476_v49 = vadd.f32 %v3309_v63, %v2444_v50  ;;  %v2445_v0 = vadd.f32 %v4238_v5, %v2406_v33 }
 0x528   : > { %v2474_v40 = vadd.f32 %v3310_v29, %v2442_v51  ;;  %v2443_v57 = vadd.f32 %v4238_v5, %v2404_v17  ;;  %v3321_v51 = vld [vmem:[%s3429_s26 + $0xd0] sm:$0xff] }
 0x529   : > { %2508 = vst.msk [vmem:[%s4249_s27 + $0x70] sm:$0xff] %vm448_vm0, %v2476_v49  ;;  %v2477_v4 = vadd.f32 %v3311_v54, %v2445_v0  ;;  %v3322_v49 = vld [vmem:[%s3429_s26 + $0xc0] sm:$0xff]  ;;  %v3324_v54 = vld [vmem:[%s3429_s26 + $0xc8] sm:$0xff] }
 0x52a   : > { %2506 = vst.msk [vmem:[%s4249_s27 + $0x60] sm:$0xff] %vm448_vm0, %v2474_v40  ;;  %v2475_v8 = vadd.f32 %v3312_v2, %v2443_v57  ;;  %v3121_v28 = vpop.f32.mrb[84].mxu1  ;;  %v3323_v40 = vld [vmem:[%s3429_s26 + $0xd8] sm:$0xff] }
 0x52b   : > { %2509 = vst.msk [vmem:[%s4249_s27 + $0x78] sm:$0xff] %vm448_vm0, %v2477_v4  ;;  %v2409_v37 = vmul.f32 %v3121_v28, %v4233_v23  ;;  %v2321_v59 = vpop.f32.mrb[85].mxu1 }
 0x52c   : > { %2507 = vst.msk [vmem:[%s4249_s27 + $0x68] sm:$0xff] %vm448_vm0, %v2475_v8  ;;  %v2407_v56 = vmul.f32 %v4233_v23, %v2321_v59  ;;  %v3122_v16 = vpop.f32.mrb[86].mxu1 }
 0x52d   : > { %v2448_v22 = vadd.f32 %v4238_v5, %v2409_v37  ;;  %v2410_v3 = vmul.f32 %v3122_v16, %v4233_v23  ;;  %v2324_v19 = vpop.f32.mrb[87].mxu1 }
 0x52e   : > { %v2446_v15 = vadd.f32 %v4238_v5, %v2407_v56  ;;  %v2408_v48 = vmul.f32 %v4233_v23, %v2324_v19 }
 0x52f   : > { %v2480_v36 = vadd.f32 %v3313_v21, %v2448_v22  ;;  %v2449_v46 = vadd.f32 %v4238_v5, %v2410_v3 }
 0x530   : > { %v2478_v41 = vadd.f32 %v3314_v10, %v2446_v15  ;;  %v2447_v1 = vadd.f32 %v4238_v5, %v2408_v48  ;;  %v3325_v15 = vld [vmem:[%s3429_s26 + $0xf0] sm:$0xff] }
 0x531   : > { %2512 = vst.msk [vmem:[%s4249_s27 + $0x90] sm:$0xff] %vm448_vm0, %v2480_v36  ;;  %v2481_v55 = vadd.f32 %v3315_v53, %v2449_v46  ;;  %v3326_v36 = vld [vmem:[%s3429_s26 + $0xe0] sm:$0xff]  ;;  %v3328_v53 = vld [vmem:[%s3429_s26 + $0xe8] sm:$0xff] }
 0x532   : > { %2510 = vst.msk [vmem:[%s4249_s27 + $0x80] sm:$0xff] %vm448_vm0, %v2478_v41  ;;  %v2479_v38 = vadd.f32 %v3316_v58, %v2447_v1  ;;  %v3125_v7 = vpop.f32.mrb[88].mxu1  ;;  %v3327_v41 = vld [vmem:[%s3429_s26 + $0xf8] sm:$0xff] }
 0x533   : > { %2513 = vst.msk [vmem:[%s4249_s27 + $0x98] sm:$0xff] %vm448_vm0, %v2481_v55  ;;  %v2413_v31 = vmul.f32 %v3125_v7, %v4233_v23  ;;  %v2337_v26 = vpop.f32.mrb[89].mxu1 }
 0x534   : > { %2511 = vst.msk [vmem:[%s4249_s27 + $0x88] sm:$0xff] %vm448_vm0, %v2479_v38  ;;  %v2411_v43 = vmul.f32 %v4233_v23, %v2337_v26  ;;  %v3126_v44 = vpop.f32.mrb[90].mxu1 }
 0x535   : > { %v2452_v62 = vadd.f32 %v4238_v5, %v2413_v31  ;;  %v2414_v12 = vmul.f32 %v3126_v44, %v4233_v23  ;;  %v2340_v34 = vpop.f32.mrb[91].mxu1 }
 0x536   : > { %v2450_v6 = vadd.f32 %v4238_v5, %v2411_v43  ;;  %v2412_v13 = vmul.f32 %v4233_v23, %v2340_v34 }
 0x537   : > { %v2484_v42 = vadd.f32 %v3317_v35, %v2452_v62  ;;  %v2453_v39 = vadd.f32 %v4238_v5, %v2414_v12 }
 0x538   : > { %v2482_v60 = vadd.f32 %v3318_v32, %v2450_v6  ;;  %v2451_v61 = vadd.f32 %v4238_v5, %v2412_v13 }
 0x539   : > { %2516 = vst.msk [vmem:[%s4249_s27 + $0xb0] sm:$0xff] %vm448_vm0, %v2484_v42  ;;  %v2485_v14 = vadd.f32 %v3319_v45, %v2453_v39 }
 0x53a   : > { %2514 = vst.msk [vmem:[%s4249_s27 + $0xa0] sm:$0xff] %vm448_vm0, %v2482_v60  ;;  %v2483_v27 = vadd.f32 %v3320_v18, %v2451_v61  ;;  %v3129_v30 = vpop.f32.mrb[92].mxu1 }
 0x53b   : > { %2517 = vst.msk [vmem:[%s4249_s27 + $0xb8] sm:$0xff] %vm448_vm0, %v2485_v14  ;;  %v2417_v11 = vmul.f32 %v3129_v30, %v4233_v23  ;;  %v2353_v24 = vpop.f32.mrb[93].mxu1 }
 0x53c   : > { %2515 = vst.msk [vmem:[%s4249_s27 + $0xa8] sm:$0xff] %vm448_vm0, %v2483_v27  ;;  %v2415_v20 = vmul.f32 %v4233_v23, %v2353_v24  ;;  %v3130_v47 = vpop.f32.mrb[94].mxu1 }
 0x53d   : > { %v2456_v52 = vadd.f32 %v4238_v5, %v2417_v11  ;;  %v2418_v25 = vmul.f32 %v3130_v47, %v4233_v23  ;;  %v2356_v50 = vpop.f32.mrb[95].mxu1 }
 0x53e   : > { %v2454_v33 = vadd.f32 %v4238_v5, %v2415_v20  ;;  %v2416_v9 = vmul.f32 %v4233_v23, %v2356_v50 }
 0x53f   : > { %v2488_v17 = vadd.f32 %v3321_v51, %v2456_v52  ;;  %v2457_v63 = vadd.f32 %v4238_v5, %v2418_v25 }
 0x540   : > { %v2486_v0 = vadd.f32 %v3322_v49, %v2454_v33  ;;  %v2455_v29 = vadd.f32 %v4238_v5, %v2416_v9 }
 0x541   : > { %2520 = vst.msk [vmem:[%s4249_s27 + $0xd0] sm:$0xff] %vm448_vm0, %v2488_v17  ;;  %v2489_v57 = vadd.f32 %v3323_v40, %v2457_v63 }
 0x542   : > { %2518 = vst.msk [vmem:[%s4249_s27 + $0xc0] sm:$0xff] %vm448_vm0, %v2486_v0  ;;  %v2487_v4 = vadd.f32 %v3324_v54, %v2455_v29  ;;  %v3133_v2 = vpop.f32.mrb[96].mxu1 }
 0x543   : > { %2521 = vst.msk [vmem:[%s4249_s27 + $0xd8] sm:$0xff] %vm448_vm0, %v2489_v57  ;;  %v2421_v8 = vmul.f32 %v3133_v2, %v4233_v23  ;;  %v2369_v28 = vpop.f32.mrb[97].mxu1 }
 0x544   : > { %2519 = vst.msk [vmem:[%s4249_s27 + $0xc8] sm:$0xff] %vm448_vm0, %v2487_v4  ;;  %v2419_v37 = vmul.f32 %v4233_v23, %v2369_v28  ;;  %v3134_v59 = vpop.f32.mrb[98].mxu1 }
 0x545   : > { %v2460_v56 = vadd.f32 %v4238_v5, %v2421_v8  ;;  %v2422_v16 = vmul.f32 %v3134_v59, %v4233_v23  ;;  %v2372_v22 = vpop.f32.mrb[99].mxu1 }
 0x546   : > { %v2458_v3 = vadd.f32 %v4238_v5, %v2419_v37  ;;  %v2420_v19 = vmul.f32 %v4233_v23, %v2372_v22 }
 0x547   : > { %v2492_v48 = vadd.f32 %v3325_v15, %v2460_v56  ;;  %v2461_v21 = vadd.f32 %v4238_v5, %v2422_v16 }
 0x548   : > { %v2490_v46 = vadd.f32 %v3326_v36, %v2458_v3  ;;  %v2459_v10 = vadd.f32 %v4238_v5, %v2420_v19 }
 0x549   : > { %2524 = vst.msk [vmem:[%s4249_s27 + $0xf0] sm:$0xff] %vm448_vm0, %v2492_v48  ;;  %v2493_v1 = vadd.f32 %v3327_v41, %v2461_v21 }
 0x54a   : > { %2522 = vst.msk [vmem:[%s4249_s27 + $0xe0] sm:$0xff] %vm448_vm0, %v2490_v46  ;;  %v2491_v55 = vadd.f32 %v3328_v53, %v2459_v10 }
 0x54b   : > { %2525 = vst.msk [vmem:[%s4249_s27 + $0xf8] sm:$0xff] %vm448_vm0, %v2493_v1 }
 0x54c   : > { %2523 = vst.msk [vmem:[%s4249_s27 + $0xe8] sm:$0xff] %vm448_vm0, %v2491_v55 }
 0x54d PF: > { %s20_s13 = sadd.s32 1, %s3335_s13  }
 0x54e   : > { %p17_p4 = scmp.ge.s32.totalorder %s20_s13, 4  }
 0x550   :  { %19 = sbr.rel (!%p17_p4) target bundleno = 1 (0x1), region = 90 }

</bundles_post_ra>
